<compile_context>
chip_gen: v6e
topology: v6e:2x2x1
jax: 0.10.0
libtpu: 0.0.40
codegen_flags: <defaults>
</compile_context>

<pallas_src>
import functools

import jax
import jax.numpy as jnp
import numpy as np
from jax.experimental import pallas as pl
from jax.experimental.pallas import tpu as pltpu


def _clip_attn_kernel(*refs, num_heads, head_dim, has_mask, output_attentions,
                      compute_dtype):
    h_ref, wqkv_ref, bqkv_ref, wo_ref, bo_ref = refs[:5]
    pos = 5
    mask_ref = None
    if has_mask:
        mask_ref = refs[pos]
        pos += 1
    out_ref = refs[pos]
    pos += 1
    attnw_ref = refs[pos] if output_attentions else None

    T = h_ref.shape[1]
    E = num_heads * head_dim

    h = h_ref[0].astype(compute_dtype)                        # (T, E)

    # Fused QKV projection: one MXU pass with N = 3E. Weights are already in
    # (in, out) layout and compute dtype; the 1/sqrt(d) scale is folded into
    # the Q slice of both weight and bias.
    qkv = jnp.dot(h, wqkv_ref[...],
                  preferred_element_type=jnp.float32) + bqkv_ref[0]   # (T, 3E) f32

    def split_heads(x):                                       # (T, E) -> (H, T, d)
        return x.reshape(T, num_heads, head_dim).transpose(1, 0, 2)

    q = split_heads(qkv[:, :E]).astype(compute_dtype)
    k = split_heads(qkv[:, E:2 * E]).astype(compute_dtype)
    v = split_heads(qkv[:, 2 * E:]).astype(compute_dtype)

    # Scores for all heads in one batched MXU call: (H, T, T), f32 accumulate.
    s = jnp.einsum("htd,hsd->hts", q, k, preferred_element_type=jnp.float32)
    if has_mask:
        s = s + mask_ref[0, 0][None, :, :]                    # combined additive mask

    # Numerically-stable softmax in f32; EUP approx-reciprocal + VALU multiply
    # instead of a long-latency divide.
    s = s - jnp.max(s, axis=-1, keepdims=True)
    e = jnp.exp(s)
    p = e * pl.reciprocal(jnp.sum(e, axis=-1, keepdims=True), approx=True)

    if output_attentions:
        attnw_ref[0] = p.astype(attnw_ref.dtype)

    # TODO(synk): attention dropout is identity here (eval mode / p == 0.0).

    # Context for all heads in one batched MXU call, then merge heads.
    ctx = jnp.einsum("hts,hsd->htd", p.astype(compute_dtype), v,
                     preferred_element_type=jnp.float32)      # (H, T, d)
    ctx = ctx.transpose(1, 0, 2).reshape(T, E)                # (T, E)

    out = jnp.dot(ctx.astype(compute_dtype), wo_ref[...],
                  preferred_element_type=jnp.float32) + bo_ref[0]
    out_ref[0] = out.astype(out_ref.dtype)


def prepare_clip_attention_params(params, num_heads, compute_dtype=jnp.bfloat16):
    """One-time transform of PyTorch-layout weights into the fused kernel layout.

    Weights are pre-transposed to (in, out) layout, the 1/sqrt(head_dim) scale
    is folded into the Q slice, and weights are pre-cast to the compute dtype
    (halves per-call weight DMA). Biases stay f32 (added to f32 accumulators).
    """
    E = params["wq"].shape[0]
    head_dim = E // num_heads
    assert head_dim * num_heads == E
    scale = head_dim ** (-0.5)
    # (3E, E) in PyTorch (out, in) layout, with the q-scale folded in.
    w_qkv = jnp.concatenate(
        [params["wq"] * scale, params["wk"], params["wv"]], axis=0)
    b_qkv = jnp.concatenate(
        [params["bq"] * scale, params["bk"], params["bv"]], axis=0)
    return {
        "w_qkv_t": jnp.transpose(w_qkv).astype(compute_dtype),   # (E, 3E): x @ W
        "b_qkv": b_qkv.reshape(1, 3 * E).astype(jnp.float32),
        "wo_t": jnp.transpose(params["wo"]).astype(compute_dtype),  # (E, E)
        "bo": params["bo"].reshape(1, E).astype(jnp.float32),
    }


def clip_attention(hidden_states, prepared_params, num_heads,
                   attention_mask=None, causal_attention_mask=None,
                   output_attentions=False, compute_dtype=jnp.bfloat16,
                   attn_weights_dtype=jnp.float32):
    """Pallas implementation of CLIPAttention.forward.

    Returns (attn_output (B, T, E), attn_weights (B, H, T, T) or None),
    matching the PyTorch module's return signature.
    """
    B, T, E = hidden_states.shape
    head_dim = E // num_heads
    assert head_dim * num_heads == E

    # Collapse the two additive masks into one (halves mask DMA traffic); skip
    # the mask input entirely when neither mask is provided.
    if attention_mask is None and causal_attention_mask is None:
        mask = None
    elif attention_mask is None:
        mask = causal_attention_mask
    elif causal_attention_mask is None:
        mask = attention_mask
    else:
        mask = causal_attention_mask + attention_mask
    has_mask = mask is not None

    kernel = functools.partial(
        _clip_attn_kernel, num_heads=num_heads, head_dim=head_dim,
        has_mask=has_mask, output_attentions=output_attentions,
        compute_dtype=compute_dtype)

    in_specs = [
        pl.BlockSpec((1, T, E), lambda b: (b, 0, 0)),      # hidden states
        pl.BlockSpec((E, 3 * E), lambda b: (0, 0)),        # fused qkv weight (in,out)
        pl.BlockSpec((1, 3 * E), lambda b: (0, 0)),        # fused qkv bias
        pl.BlockSpec((E, E), lambda b: (0, 0)),            # out_proj weight (in,out)
        pl.BlockSpec((1, E), lambda b: (0, 0)),            # out_proj bias
    ]
    inputs = [hidden_states,
              prepared_params["w_qkv_t"].astype(compute_dtype),
              prepared_params["b_qkv"],
              prepared_params["wo_t"].astype(compute_dtype),
              prepared_params["bo"]]
    if has_mask:
        in_specs.append(pl.BlockSpec((1, 1, T, T), lambda b: (b, 0, 0, 0)))
        inputs.append(mask.astype(jnp.float32))

    if output_attentions:
        out_shape = (
            jax.ShapeDtypeStruct((B, T, E), hidden_states.dtype),
            jax.ShapeDtypeStruct((B, num_heads, T, T), attn_weights_dtype),
        )
        out_specs = (
            pl.BlockSpec((1, T, E), lambda b: (b, 0, 0)),
            pl.BlockSpec((1, num_heads, T, T), lambda b: (b, 0, 0, 0)),
        )
    else:
        out_shape = jax.ShapeDtypeStruct((B, T, E), hidden_states.dtype)
        out_specs = pl.BlockSpec((1, T, E), lambda b: (b, 0, 0))

    # TODO(synk): for very long sequences / large E on v7x (64 MiB VMEM),
    # additionally tile the query dimension flash-style (grid=(B, T//tq)).
    result = pl.pallas_call(
        kernel,
        out_shape=out_shape,
        grid_spec=pltpu.PrefetchScalarGridSpec(
            num_scalar_prefetch=0,
            grid=(B,),
            in_specs=in_specs,
            out_specs=out_specs,
        ),
        compiler_params=pltpu.CompilerParams(
            dimension_semantics=("parallel",),
            vmem_limit_bytes=48 * 1024 * 1024,
        ),
    )(*inputs)

    if output_attentions:
        attn_output, attn_weights = result
        return attn_output, attn_weights
    return result, None


def _reference(hidden_states, params, num_heads, cmask=None, amask=None):
    """Pure-JAX f32 reference mirroring the PyTorch forward, for validation."""
    B, T, E = hidden_states.shape
    d = E // num_heads
    scale = d ** (-0.5)
    q = (hidden_states @ params["wq"].T + params["bq"]) * scale
    k = hidden_states @ params["wk"].T + params["bk"]
    v = hidden_states @ params["wv"].T + params["bv"]

    def shape(x):
        return x.reshape(B, T, num_heads, d).transpose(0, 2, 1, 3)

    qh, kh, vh = shape(q), shape(k), shape(v)
    w = jnp.einsum("bhtd,bhsd->bhts", qh, kh)
    if cmask is not None:
        w = w + cmask
    if amask is not None:
        w = w + amask
    w = jax.nn.softmax(w, axis=-1)
    ctx = jnp.einsum("bhts,bhsd->bhtd", w, vh)
    ctx = ctx.transpose(0, 2, 1, 3).reshape(B, T, E)
    out = ctx @ params["wo"].T + params["bo"]
    return out, w


if __name__ == "__main__":
    # Small config: hidden_size=128, num_attention_heads=4, batch=2, seq=16.
    B, T, E, H = 2, 16, 128, 4

    key = jax.random.PRNGKey(0)
    keys = jax.random.split(key, 10)
    s = 0.02
    params = {
        "wq": jax.random.normal(keys[0], (E, E), jnp.float32) * s,
        "bq": jax.random.normal(keys[1], (E,), jnp.float32) * s,
        "wk": jax.random.normal(keys[2], (E, E), jnp.float32) * s,
        "bk": jax.random.normal(keys[3], (E,), jnp.float32) * s,
        "wv": jax.random.normal(keys[4], (E, E), jnp.float32) * s,
        "bv": jax.random.normal(keys[5], (E,), jnp.float32) * s,
        "wo": jax.random.normal(keys[6], (E, E), jnp.float32) * s,
        "bo": jax.random.normal(keys[7], (E,), jnp.float32) * s,
    }
    hidden = jax.random.normal(keys[8], (B, T, E), jnp.float32)

    # Causal mask in the PyTorch (B, 1, T, T) additive convention.
    causal = jnp.where(
        jnp.tril(jnp.ones((T, T), bool)), 0.0, -1e9
    ).astype(jnp.float32)[None, None].repeat(B, axis=0)

    prepped = prepare_clip_attention_params(params, H)

    # Fast path: no attention-weights writeback.
    out_fast, w_none = clip_attention(hidden, prepped, H,
                                      causal_attention_mask=causal,
                                      output_attentions=False)
    jax.block_until_ready(out_fast)
    assert w_none is None

    # Full path: also emit attention weights for validation.
    out, attn_w = clip_attention(hidden, prepped, H,
                                 causal_attention_mask=causal,
                                 output_attentions=True)
    jax.block_until_ready(out)
    jax.block_until_ready(attn_w)

    ref_out, ref_w = _reference(hidden, params, H, cmask=causal)

    # bf16 matmuls + approx reciprocal -> loosened tolerances vs f32 reference.
    assert np.allclose(np.asarray(out), np.asarray(ref_out), atol=1e-2, rtol=1e-2)
    assert np.allclose(np.asarray(out_fast), np.asarray(ref_out), atol=1e-2, rtol=1e-2)
    assert np.allclose(np.asarray(attn_w), np.asarray(ref_w), atol=1e-2, rtol=1e-2)

    print("KERNEL_OK")
</pallas_src>

<mosaic_0001>
module attributes {stable_mosaic.version = 11 : i64} {
  func.func @_clip_attn_kernel(%arg0: i32, %arg1: memref<1x16x128xf32, #tpu.memory_space<vmem>>, %arg2: memref<128x384xbf16, #tpu.memory_space<vmem>>, %arg3: memref<1x384xf32, #tpu.memory_space<vmem>>, %arg4: memref<128x128xbf16, #tpu.memory_space<vmem>>, %arg5: memref<1x128xf32, #tpu.memory_space<vmem>>, %arg6: memref<1x1x16x16xf32, #tpu.memory_space<vmem>>, %arg7: memref<1x16x128xf32, #tpu.memory_space<vmem>>) attributes {dimension_semantics = [#tpu.dimension_semantics<parallel>], iteration_bounds = array<i64: 2>, scalar_prefetch = 0 : i64, scratch_operands = 0 : i64, tpu.core_type = #tpu.core_type<tc>, window_params = [{transform_indices = @transform_0, window_bounds = array<i64: 1, 16, 128>}, {pipeline_mode = #tpu.pipeline_mode<synchronous>, transform_indices = @transform_1, window_bounds = array<i64: 128, 384>}, {pipeline_mode = #tpu.pipeline_mode<synchronous>, transform_indices = @transform_2, window_bounds = array<i64: 1, 384>}, {pipeline_mode = #tpu.pipeline_mode<synchronous>, transform_indices = @transform_3, window_bounds = array<i64: 128, 128>}, {pipeline_mode = #tpu.pipeline_mode<synchronous>, transform_indices = @transform_4, window_bounds = array<i64: 1, 128>}, {transform_indices = @transform_5, window_bounds = array<i64: 1, 1, 16, 16>}, {transform_indices = @transform_6, window_bounds = array<i64: 1, 16, 128>}]} {
    %c0 = arith.constant 0 : index
    %c0_0 = arith.constant 0 : index
    %c0_1 = arith.constant 0 : index
    %0 = vector.load %arg1[%c0, %c0_0, %c0_1] : memref<1x16x128xf32, #tpu.memory_space<vmem>>, vector<1x16x128xf32>
    %1 = vector.shape_cast %0 : vector<1x16x128xf32> to vector<16x128xf32>
    %2 = arith.truncf %1 : vector<16x128xf32> to vector<16x128xbf16>
    %c0_2 = arith.constant 0 : index
    %c0_3 = arith.constant 0 : index
    %3 = vector.load %arg2[%c0_2, %c0_3] : memref<128x384xbf16, #tpu.memory_space<vmem>>, vector<128x384xbf16>
    %cst = arith.constant dense<0.000000e+00> : vector<16x384xf32>
    %4 = tpu.matmul %2, %3, %cst {dimension_numbers = #tpu.dot_dimension_numbers<[1], [0], [0], [1], [0, 0, 1, 1], [], []>} : vector<16x128xbf16>, vector<128x384xbf16>, vector<16x384xf32> -> vector<16x384xf32>
    %c0_4 = arith.constant 0 : index
    %c0_5 = arith.constant 0 : index
    %5 = vector.load %arg3[%c0_4, %c0_5] : memref<1x384xf32, #tpu.memory_space<vmem>>, vector<1x384xf32>
    %6 = vector.shape_cast %5 : vector<1x384xf32> to vector<384xf32>
    %7 = vector.shape_cast %6 : vector<384xf32> to vector<1x384xf32>
    %8 = vector.broadcast %7 : vector<1x384xf32> to vector<16x384xf32>
    %9 = arith.addf %4, %8 : vector<16x384xf32>
    %10 = vector.extract_strided_slice %9 {offsets = [0, 0], sizes = [16, 128], strides = [1, 1]} : vector<16x384xf32> to vector<16x128xf32>
    %11 = vector.shape_cast %10 : vector<16x128xf32> to vector<16x4x32xf32>
    %12 = tpu.transpose %11, [1, 0, 2] : vector<16x4x32xf32> -> vector<4x16x32xf32>
    %13 = arith.truncf %12 : vector<4x16x32xf32> to vector<4x16x32xbf16>
    %14 = vector.extract_strided_slice %9 {offsets = [0, 128], sizes = [16, 128], strides = [1, 1]} : vector<16x384xf32> to vector<16x128xf32>
    %15 = vector.shape_cast %14 : vector<16x128xf32> to vector<16x4x32xf32>
    %16 = tpu.transpose %15, [1, 0, 2] : vector<16x4x32xf32> -> vector<4x16x32xf32>
    %17 = arith.truncf %16 : vector<4x16x32xf32> to vector<4x16x32xbf16>
    %18 = vector.extract_strided_slice %9 {offsets = [0, 256], sizes = [16, 128], strides = [1, 1]} : vector<16x384xf32> to vector<16x128xf32>
    %19 = vector.shape_cast %18 : vector<16x128xf32> to vector<16x4x32xf32>
    %20 = tpu.transpose %19, [1, 0, 2] : vector<16x4x32xf32> -> vector<4x16x32xf32>
    %21 = arith.truncf %20 : vector<4x16x32xf32> to vector<4x16x32xbf16>
    "tpu.trace_start"() <{level = 10 : i32, message = "htd,hsd->hts"}> : () -> ()
    %cst_6 = arith.constant dense<0.000000e+00> : vector<4x16x16xf32>
    %22 = tpu.matmul %13, %17, %cst_6 {dimension_numbers = #tpu.dot_dimension_numbers<[2], [2], [1], [1], [0, 0, 0, 1, 1, 1], [0], [0]>} : vector<4x16x32xbf16>, vector<4x16x32xbf16>, vector<4x16x16xf32> -> vector<4x16x16xf32>
    "tpu.trace_stop"() : () -> ()
    %c0_7 = arith.constant 0 : index
    %c0_8 = arith.constant 0 : index
    %c0_9 = arith.constant 0 : index
    %c0_10 = arith.constant 0 : index
    %23 = vector.load %arg6[%c0_7, %c0_8, %c0_9, %c0_10] : memref<1x1x16x16xf32, #tpu.memory_space<vmem>>, vector<1x1x16x16xf32>
    %24 = vector.shape_cast %23 : vector<1x1x16x16xf32> to vector<16x16xf32>
    %25 = vector.shape_cast %24 : vector<16x16xf32> to vector<1x16x16xf32>
    %26 = vector.broadcast %25 : vector<1x16x16xf32> to vector<4x16x16xf32>
    %27 = arith.addf %22, %26 : vector<4x16x16xf32>
    %cst_11 = arith.constant dense<0xFF800000> : vector<4x16xf32>
    %28 = vector.multi_reduction <maximumf>, %27, %cst_11 [2] : vector<4x16x16xf32> to vector<4x16xf32>
    %29 = vector.shape_cast %28 : vector<4x16xf32> to vector<4x16x1xf32>
    %30 = vector.broadcast %29 : vector<4x16x1xf32> to vector<4x16x16xf32>
    %31 = arith.subf %27, %30 : vector<4x16x16xf32>
    %32 = math.exp %31 : vector<4x16x16xf32>
    %cst_12 = arith.constant dense<0.000000e+00> : vector<4x16xf32>
    %33 = vector.multi_reduction <add>, %32, %cst_12 [2] : vector<4x16x16xf32> to vector<4x16xf32>
    %34 = vector.shape_cast %33 : vector<4x16xf32> to vector<4x16x1xf32>
    %35 = tpu.reciprocal %34 {approx = true} : vector<4x16x1xf32> -> vector<4x16x1xf32>
    %36 = vector.broadcast %35 : vector<4x16x1xf32> to vector<4x16x16xf32>
    %37 = arith.mulf %32, %36 : vector<4x16x16xf32>
    %38 = arith.truncf %37 : vector<4x16x16xf32> to vector<4x16x16xbf16>
    "tpu.trace_start"() <{level = 10 : i32, message = "hts,hsd->htd"}> : () -> ()
    %cst_13 = arith.constant dense<0.000000e+00> : vector<4x16x32xf32>
    %39 = tpu.matmul %38, %21, %cst_13 {dimension_numbers = #tpu.dot_dimension_numbers<[2], [1], [1], [2], [0, 0, 0, 1, 1, 2], [0], [0]>} : vector<4x16x16xbf16>, vector<4x16x32xbf16>, vector<4x16x32xf32> -> vector<4x16x32xf32>
    "tpu.trace_stop"() : () -> ()
    %40 = tpu.transpose %39, [1, 0, 2] : vector<4x16x32xf32> -> vector<16x4x32xf32>
    %41 = vector.shape_cast %40 : vector<16x4x32xf32> to vector<16x128xf32>
    %42 = arith.truncf %41 : vector<16x128xf32> to vector<16x128xbf16>
    %c0_14 = arith.constant 0 : index
    %c0_15 = arith.constant 0 : index
    %43 = vector.load %arg4[%c0_14, %c0_15] : memref<128x128xbf16, #tpu.memory_space<vmem>>, vector<128x128xbf16>
    %cst_16 = arith.constant dense<0.000000e+00> : vector<16x128xf32>
    %44 = tpu.matmul %42, %43, %cst_16 {dimension_numbers = #tpu.dot_dimension_numbers<[1], [0], [0], [1], [0, 0, 1, 1], [], []>} : vector<16x128xbf16>, vector<128x128xbf16>, vector<16x128xf32> -> vector<16x128xf32>
    %c0_17 = arith.constant 0 : index
    %c0_18 = arith.constant 0 : index
    %45 = vector.load %arg5[%c0_17, %c0_18] : memref<1x128xf32, #tpu.memory_space<vmem>>, vector<1x128xf32>
    %46 = vector.shape_cast %45 : vector<1x128xf32> to vector<128xf32>
    %47 = vector.shape_cast %46 : vector<128xf32> to vector<1x128xf32>
    %48 = vector.broadcast %47 : vector<1x128xf32> to vector<16x128xf32>
    %49 = arith.addf %44, %48 : vector<16x128xf32>
    %c0_19 = arith.constant 0 : index
    %c0_20 = arith.constant 0 : index
    %c0_21 = arith.constant 0 : index
    %50 = vector.load %arg7[%c0_19, %c0_20, %c0_21] : memref<1x16x128xf32, #tpu.memory_space<vmem>>, vector<1x16x128xf32>
    %51 = vector.shape_cast %50 : vector<1x16x128xf32> to vector<16x128xf32>
    %52 = vector.shape_cast %49 : vector<16x128xf32> to vector<1x16x128xf32>
    tpu.vector_store %arg7[%c0_19, %c0_20, %c0_21], %52 {strides = array<i32>} : memref<1x16x128xf32, #tpu.memory_space<vmem>>, vector<1x16x128xf32>,
    return
  }
  func.func @transform_0(%arg0: i32) -> (i32, i32, i32) {
    %c0_i32 = arith.constant 0 : i32
    %c0_i32_0 = arith.constant 0 : i32
    %c0_i32_1 = arith.constant 0 : i32
    return %arg0, %c0_i32, %c0_i32_0 : i32, i32, i32
  }
  func.func @transform_1(%arg0: i32) -> (i32, i32) {
    %c0_i32 = arith.constant 0 : i32
    %c0_i32_0 = arith.constant 0 : i32
    %c0_i32_1 = arith.constant 0 : i32
    return %c0_i32, %c0_i32_0 : i32, i32
  }
  func.func @transform_2(%arg0: i32) -> (i32, i32) {
    %c0_i32 = arith.constant 0 : i32
    %c0_i32_0 = arith.constant 0 : i32
    %c0_i32_1 = arith.constant 0 : i32
    return %c0_i32, %c0_i32_0 : i32, i32
  }
  func.func @transform_3(%arg0: i32) -> (i32, i32) {
    %c0_i32 = arith.constant 0 : i32
    %c0_i32_0 = arith.constant 0 : i32
    %c0_i32_1 = arith.constant 0 : i32
    return %c0_i32, %c0_i32_0 : i32, i32
  }
  func.func @transform_4(%arg0: i32) -> (i32, i32) {
    %c0_i32 = arith.constant 0 : i32
    %c0_i32_0 = arith.constant 0 : i32
    %c0_i32_1 = arith.constant 0 : i32
    return %c0_i32, %c0_i32_0 : i32, i32
  }
  func.func @transform_5(%arg0: i32) -> (i32, i32, i32, i32) {
    %c0_i32 = arith.constant 0 : i32
    %c0_i32_0 = arith.constant 0 : i32
    %c0_i32_1 = arith.constant 0 : i32
    %c0_i32_2 = arith.constant 0 : i32
    return %arg0, %c0_i32, %c0_i32_0, %c0_i32_1 : i32, i32, i32, i32
  }
  func.func @transform_6(%arg0: i32) -> (i32, i32, i32) {
    %c0_i32 = arith.constant 0 : i32
    %c0_i32_0 = arith.constant 0 : i32
    %c0_i32_1 = arith.constant 0 : i32
    return %arg0, %c0_i32, %c0_i32_0 : i32, i32, i32
  }
}

</mosaic_0001>

<bundles_post_ra>
// kernel: tpu_custom_call.1
= control target key start
LH: loop header
LB: loop body
LE: loop exit
PB: predicated region body
PF: predicated region fallthrough
CT: control target
= control target key end

     0   :  { %s3716_s0 = inlined_call_operand.hbm [shape: f32[2,16,128], index: 0, kind: input, shape index: {}]   ;;  %s3717_s1 = inlined_call_operand.hbm [shape: bf16[128,384], index: 1, kind: input, shape index: {}]   ;;  %s3718_s2 = inlined_call_operand.vmem [shape: f32[1,384], index: 2, kind: input, shape index: {}]   ;;  %s3719_s3 = inlined_call_operand.hbm [shape: bf16[128,128], index: 3, kind: input, shape index: {}]   ;;  %s3720_s4 = inlined_call_operand.vmem [shape: f32[1,128], index: 4, kind: input, shape index: {}]   ;;  %s3721_s5 = inlined_call_operand.hbm [shape: f32[2,1,16,16], index: 5, kind: input, shape index: {}]   ;;  %s3722_s6 = inlined_call_operand.hbm [shape: f32[2,16,128], index: 6, kind: output, shape index: {}]  }
   0x1   :  { %3728 = sst [smem:[#allocation15_spill]] %s3716_s0 }
   0x2   :  { %3729 = sst [smem:[#allocation16_spill]] %s3717_s1 }
   0x3   :  { %3730 = sst [smem:[#allocation17_spill]] %s3719_s3 }
   0x4   :  { %11 = vsyncpa [#allocation3], 0 }
   0x5   :  { %13 = vsyncpa [#allocation3 + $0x1], 0 }
   0x6   :  { %14 = vsyncpa [#allocation6], 0 }
   0x7   :  { %15 = vsyncpa [#allocation9], 0 }
   0x8   :  { %17 = vsyncpa [#allocation9 + $0x1], 0 }
   0x9   :  { %18 = vsyncpa [#allocation4], 0 }
   0xa   :  { %20 = vsyncpa [#allocation4 + $0x1], 0  ;;  %s3117_s21 = smov 0   ;;  %s3119_s22 = smov 0  }
   0xb   :  { %s3121_s23 = smov 0   ;;  %s3123_s24 = smov 0  }
   0xc LB: > { %s3138_s25 = sadd.s32 4294967295, %s3059_s24   ;;  %s2500_s26 = sadd.s32 4294967294, %s3059_s24   ;;  %s3059_s24 = sphi %s3123_s24, %s3752_s24   ;;  %s3055_s23 = sphi %s3121_s23, %s3751_s23   ;;  %s3051_s22 = sphi %s3119_s22, %s3750_s22   ;;  %s3047_s21 = sphi %s3117_s21, %s3749_s21  }
   0xd   : > { %p46_p0 = scmp.ne.s32.totalorder %s3051_s22, %s3047_s21  ;;  %p3723_p1 = scmp.eq.s32.totalorder %s3138_s25, 0 }
   0xe   : > { %p186_p3 = scmp.eq.s32.totalorder %s2500_s26, 1  ;;  %p2501_p5 = scmp.ge.s32.totalorder %s3059_s24, 1 }
   0xf   : > { %p3147_p4 = por %p3723_p1, %p46_p0  ;;  %p193_p7 = scmp.lt.s32.totalorder %s3059_s24, 3 }
  0x10   : > { %p3152_p6 = por %p186_p3, %p46_p0  ;;  %s3061_s30 = smov [#allocation5]  }
  0x11   : > { %s3731_s27 = scalar_select %p3147_p4, 1, 0 }
  0x12   : > { %s3732_s28 = scalar_select %p3152_p6, 1, 0 }
  0x13   : > { %p3157_p8 = pnand %p2501_p5, %p193_p7  ;;  %s205_s7 = sshll.u32 %s3061_s30, 4  ;;  %s206_s7 = int_to_ptr.vmem [resolvable:$true] %s205_s7 }
  0x14   : > { %s3062_s9 = smov [#allocation7]   ;;  %s2890_s11 = scalar_lea.vmem %s206_s7, 3072 }
  0x15   : > { %p2718_p9 = pneg %p3157_p8  ;;  %s221_s10 = sshll.u32 %s3062_s9, 4  ;;  %s222_s10 = int_to_ptr.vmem [resolvable:$true] %s221_s10 }
  0x16   : > { %p2891_p13 = scmp.ne.s32.totalorder %s206_s7, %s2890_s11  ;;  %p2898_p5 = scmp.lt.s32.totalorder %s206_s7, %s206_s7 }
  0x17   : > { %p3166_p11 = pnand %p2718_p9, %p3723_p1  ;;  %p2899_p7 = scmp.lt.s32.totalorder %s2890_s11, %s2890_s11 }
  0x19   : > { %p2881_p12 = pneg %p3166_p11  ;;  %p2900_p10 = por %p2899_p7, %p2898_p5 }
  0x1b   : > { %p2893_p0 = pnand %p2891_p13, %p2881_p12 }
  0x1d   : > { %p2894_p3 = pneg %p2893_p0 }
  0x1f   : > { %p2901_p9 = pnand %p2900_p10, %p2894_p3 }
  0x21   : > { %2904 = shalt.err (!%p2901_p9)
}
  0x22   : > { %s3063_s12 = smov 192   ;;  %s3064_s13 = smov 12  }
  0x23   : > { %s3735_s1 = sld [smem:[#allocation16_spill]]  ;;  %s2916_s16 = scalar_lea.vmem %s222_s10, 1024 }
  0x24   : > { %p2917_p1 = scmp.ne.s32.totalorder %s222_s10, %s2916_s16  ;;  %p2924_p2 = scmp.lt.s32.totalorder %s222_s10, %s222_s10 }
  0x25   : > { %p2925_p6 = scmp.lt.s32.totalorder %s2916_s16, %s2916_s16 }
  0x26   : > { %p2919_p13 = pnand %p2917_p1, %p2881_p12 }
  0x27   : > { %p2926_p5 = por %p2925_p6, %p2924_p2 }
  0x28   : > { %p2920_p0 = pneg %p2919_p13 }
  0x29   : > { %2721 = dma.hbm_to_vmem [thread:$0]  (!%p3166_p11), %s3735_s1, 3072, %s206_s7, [#allocation6], %s3063_s12, %s3063_s12, %s3064_s13  }
  0x2a   : > { %p2927_p10 = pnand %p2926_p5, %p2920_p0 }
  0x2c   : > { %2930 = shalt.err (!%p2927_p10)
}
  0x2d   : > { %s3065_s17 = smov 64   ;;  %s3066_s18 = smov 4  }
  0x2e   : > { %s3736_s3 = sld [smem:[#allocation17_spill]]  ;;  %s3189_s26 = sadd.s32 1, %s3059_s24  }
  0x2f   : > { %s30_s30 = ssub.s32 %s3059_s24, %s3189_s26  ;;  %s33_s7 = sadd.s32 1, %s3055_s23 }
  0x30   : > { %p31_p1 = scmp.eq.s32.totalorder %s30_s30, 0  ;;  %p40_p2 = scmp.ne.s32.totalorder %s3055_s23, %s3051_s22 }
  0x31   : > { %p41_p6 = scmp.eq.s32.totalorder %s3059_s24, 0  ;;  %p3737_p3 = scmp.eq.s32.totalorder %s3138_s25, 1 }
  0x32   : > { %s3198_s9 = scalar_select %p31_p1, %s3055_s23, %s33_s7  }
  0x33   : > { %p42_p12 = por %p41_p6, %p40_p2  ;;  %p3202_p7 = por %p3737_p3, %p40_p2 }
  0x34   : > { %2724 = dma.hbm_to_vmem [thread:$0]  (!%p3166_p11), %s3736_s3, 1024, %s222_s10, [#allocation6], %s3065_s17, %s3065_s17, %s3066_s18  }
  0x35   : > { %s3738_s11 = scalar_select %p3202_p7, 1, 0 }
  0x36   : > { %p2738_p9 = scmp.lt.s32.totalorder %s3059_s24, 2  ;;  %s3208_s8 = sand.u32 1, %s3055_s23  }
  0x37   : > { %s3724_s10 = sshll.u32 %s3208_s8, 4  ;;  %s3725_s12 = sshll.u32 %s3059_s24, 8 }
  0x38   : > { %s3739_s0 = sld [smem:[#allocation15_spill]]  ;;  %s242_s16 = scalar_lea.vmem [#allocation2], %s3724_s10 }
  0x39   : > { %s249_s17 = sshll.u32 %s242_s16, 4  ;;  %p3223_p11 = pnand %p2738_p9, %p42_p12  ;;  %s3221_s17 = int_to_ptr.vmem [resolvable:$true] %s249_s17 }
  0x3a   : > { %s239_s19 = scalar_lea.sflag [#allocation3], %s3208_s8 }
  0x3b   : > { %p2933_p0 = pneg %p3223_p11 }
  0x3e   : > { %s3217_s15 = scalar_lea.hbm %s3739_s0, %s3725_s12  ;;  %s2936_s13 = scalar_lea.hbm %s3739_s0, 512 }
  0x3f   : > { %s2931_s20 = scalar_lea.hbm %s3217_s15, 256  ;;  %p2937_p1 = scmp.lt.s32.totalorder %s3217_s15, %s3739_s0 }
  0x40   : > { %p2932_p13 = scmp.ne.s32.totalorder %s3217_s15, %s2931_s20  ;;  %p2938_p2 = scmp.lt.s32.totalorder %s2936_s13, %s2931_s20 }
  0x42   : > { %p2934_p5 = pnand %p2933_p0, %p2932_p13  ;;  %p2939_p6 = por %p2938_p2, %p2937_p1 }
  0x44   : > { %p2935_p10 = pneg %p2934_p5 }
  0x46   : > { %p2940_p12 = pnand %p2939_p6, %p2935_p10 }
  0x48   : > { %2943 = shalt.err (!%p2940_p12)
}
  0x49   : > { %s2944_s10 = scalar_lea.vmem %s3221_s17, 256  ;;  %s3067_s30 = smov [#allocation2]  }
  0x4a   : > { %p2945_p3 = scmp.ne.s32.totalorder %s3221_s17, %s2944_s10  ;;  %s2949_s7 = sshll.u32 %s3067_s30, 4  ;;  %s2950_s7 = int_to_ptr.vmem [resolvable:$false] %s2949_s7 }
  0x4b   : > { %s2951_s12 = scalar_lea.vmem %s2950_s7, 512  ;;  %p2952_p5 = scmp.lt.s32.totalorder %s3221_s17, %s2950_s7 }
  0x4c   : > { %p2947_p9 = pnand %p2945_p3, %p2933_p0  ;;  %p2953_p7 = scmp.lt.s32.totalorder %s2951_s12, %s2944_s10 }
  0x4e   : > { %p2948_p13 = pneg %p2947_p9  ;;  %p2954_p4 = por %p2953_p7, %p2952_p5 }
  0x50   : > { %p2955_p1 = pnand %p2954_p4, %p2948_p13 }
  0x52   : > { %2958 = shalt.err (!%p2955_p1)
}
  0x53   : > { %s3068_s20 = smov 128   ;;  %s3069_s13 = smov 8  }
  0x54   : > { %2728 = dma.hbm_to_vmem [thread:$0]  (!%p3223_p11), %s3217_s15, 256, %s3221_s17, %s239_s19, %s3068_s20, %s3068_s20, %s3069_s13  }
  0x55   : > { %s3741_s10 = sshll.u32 %s3059_s24, 8  ;;  %s3742_s30 = sshll.u32 %s3208_s8, 4 }
  0x56   : > { %s3262_s16 = scalar_lea.hbm %s3721_s5, %s3741_s10  ;;  %s263_s7 = scalar_lea.vmem [#allocation8], %s3742_s30 }
  0x57   : > { %s270_s0 = sshll.u32 %s263_s7, 4  ;;  %s260_s1 = scalar_lea.sflag [#allocation9], %s3208_s8  ;;  %s3266_s0 = int_to_ptr.vmem [resolvable:$true] %s270_s0 }
  0x58   : > { %s2959_s3 = scalar_lea.hbm %s3262_s16, 256  ;;  %s2964_s19 = scalar_lea.hbm %s3721_s5, 512 }
  0x59   : > { %p2960_p4 = scmp.ne.s32.totalorder %s3262_s16, %s2959_s3  ;;  %p2965_p2 = scmp.lt.s32.totalorder %s3262_s16, %s3721_s5 }
  0x5a   : > { %p2966_p6 = scmp.lt.s32.totalorder %s2964_s19, %s2959_s3 }
  0x5b   : > { %p2962_p7 = pnand %p2960_p4, %p2933_p0 }
  0x5c   : > { %p2967_p12 = por %p2966_p6, %p2965_p2 }
  0x5d   : > { %p2963_p10 = pneg %p2962_p7 }
  0x5f   : > { %p2968_p3 = pnand %p2967_p12, %p2963_p10 }
  0x61   : > { %2971 = shalt.err (!%p2968_p3)
}
  0x62   : > { %s2972_s8 = scalar_lea.vmem %s3266_s0, 256  ;;  %s3070_s14 = smov [#allocation8]  }
  0x63   : > { %p2973_p9 = scmp.ne.s32.totalorder %s3266_s0, %s2972_s8  ;;  %s2977_s30 = sshll.u32 %s3070_s14, 4  ;;  %s2978_s30 = int_to_ptr.vmem [resolvable:$false] %s2977_s30 }
  0x64   : > { %s2979_s7 = scalar_lea.vmem %s2978_s30, 512  ;;  %p2980_p1 = scmp.lt.s32.totalorder %s3266_s0, %s2978_s30 }
  0x65   : > { %p2975_p13 = pnand %p2973_p9, %p2933_p0  ;;  %p2981_p4 = scmp.lt.s32.totalorder %s2979_s7, %s2972_s8 }
  0x67   : > { %p2976_p5 = pneg %p2975_p13  ;;  %p2982_p7 = por %p2981_p4, %p2980_p1 }
  0x69   : > { %p2983_p2 = pnand %p2982_p7, %p2976_p5 }
  0x6b   : > { %2986 = shalt.err (!%p2983_p2)
}
  0x6c   : > { %2731 = dma.hbm_to_vmem [thread:$0]  (!%p3223_p11), %s3262_s16, 256, %s3266_s0, %s260_s1, %s3068_s20, %s3068_s20, %s3069_s13  }
  0x6d   : > { %282 = sbr.rel (%p3157_p8) target bundleno = 1641 (0x669), region = 44  ;;  %s3297_s3 = sand.u32 (!%p3157_p8), 1, %s3051_s22  }
  0x6e   : > { %s3300_s15 = sshll.u32 (!%p3157_p8), %s3297_s3, 4  ;;  %s285_s17 = scalar_lea.sflag (!%p3157_p8), [#allocation3], %s3297_s3 }
  0x6f   : > { %s288_s18 = scalar_lea.vmem (!%p3157_p8), [#allocation2], %s3300_s15  ;;  %p3743_p0 = scmp.ne.s32.totalorder (!%p3157_p8), %s3731_s27, 0 }
  0x72   : > { %3030 = dma.done.wait (%p3743_p0), %s285_s17, 256  }
  0x73   : > { %3032 = vsyncadd (%p3743_p0), %s285_s17, 4294967040  ;;  %p3744_p11 = scmp.eq.s32.totalorder %s3138_s25, 0 }
  0x75   : > { %3034 = dma.done.wait (%p3744_p11), [#allocation6], 4096   ;;  %p3745_p8 = pmov %p3744_p11 }
  0x76   : > { %s302_s0 = scalar_lea.sflag [#allocation9], %s3297_s3  ;;  %s305_s1 = scalar_lea.vmem [#allocation8], %s3300_s15 }
  0x77   : > { %3036 = vsyncadd (%p3745_p8), [#allocation6], 4294963200 }
  0x78   : > { %3038 = dma.done.wait (%p3743_p0), %s302_s0, 256  }
  0x79   : > { %3040 = vsyncadd (%p3743_p0), %s302_s0, 4294967040  ;;  %v3071_v0 = vmov 0   ;;  %v2807_v1 = vld [vmem:[#allocation5 + $0xac] ss:$12 sps:$4 sm:$0xff]   ;;  %v2809_v2 = vld [vmem:[#allocation5 + $0xa8] ss:$12 sps:$4 sm:$0xff]   ;;  %v377_v22 = vlaneseq }
  0x7a   : > { %552 = vmatprep.mubr.bf16.mxu0 %v3071_v0  ;;  %520 = vmatprep.subr.bf16.mxu0 %v2807_v1  ;;  %v2810_v3 = vld [vmem:[#allocation5 + $0x94] ss:$12 sps:$4 sm:$0xff]   ;;  %v2812_v4 = vld [vmem:[#allocation5 + $0x90] ss:$12 sps:$4 sm:$0xff]   ;;  %v2815_v6 = vld [vmem:[#allocation5 + $0x78] ss:$12 sps:$4 sm:$0xff]  }
  0x7b   : > { %521 = vmatpush1.bf16.msra.mxu0 %v2809_v2  ;;  %v2813_v5 = vld [vmem:[#allocation5 + $0x7c] ss:$12 sps:$4 sm:$0xff]   ;;  %v2816_v7 = vld [vmem:[#allocation5 + $0x64] ss:$12 sps:$4 sm:$0xff]   ;;  %v2818_v8 = vld [vmem:[#allocation5 + $0x60] ss:$12 sps:$4 sm:$0xff]  }
  0x7c   : > { %522 = vmatprep.subr.bf16.mxu0 %v2810_v3  ;;  %v2819_v9 = vld [vmem:[#allocation5 + $0x4c] ss:$12 sps:$4 sm:$0xff]   ;;  %v2821_v10 = vld [vmem:[#allocation5 + $0x48] ss:$12 sps:$4 sm:$0xff]   ;;  %v2824_v12 = vld [vmem:[#allocation5 + $0x30] ss:$12 sps:$4 sm:$0xff]  }
  0x7d   : > { %v2822_v11 = vld [vmem:[#allocation5 + $0x34] ss:$12 sps:$4 sm:$0xff]   ;;  %v2825_v13 = vld [vmem:[#allocation5 + $0x1c] ss:$12 sps:$4 sm:$0xff]   ;;  %v2827_v14 = vld [vmem:[#allocation5 + $0x18] ss:$12 sps:$4 sm:$0xff]  }
  0x7e   : > { %v2828_v15 = vld [vmem:[#allocation5 + $0x4] ss:$12 sps:$4 sm:$0xff]   ;;  %v2830_v16 = vld [vmem:[#allocation5] ss:$12 sps:$4 sm:$0xff]   ;;  %v3072_v21 = vmov 0.0   ;;  %v3325_v23 = vshrl.u32 %v377_v22, 7 }
  0x7f   : > { %523 = vmatpush1.bf16.msra.mxu0 %v2812_v4  ;;  %v340_v17 = vld [vmem:[%s288_s18] sm:$0xff]  ;;  %v341_v18 = vld [vmem:[%s288_s18 + $0x8] sm:$0xff]  ;;  %2616 = vmatprep.subr.bf16.mxu1 %v3072_v21  ;;  %s3073_s20 = smov 96   ;;  %s3074_s13 = smov 64   ;;  %vm3076_vm0 = vmmov 0   ;;  %vm1494_vm1 = vcmask 261120  }
  0x80   : > { %524 = vmatprep.subr.bf16.mxu0 %v2813_v5  ;;  %v342_v19 = vpack.c.bf16 %v341_v18, %v340_v17  ;;  %v2831_v20 = vld [vmem:[#allocation5 + $0xb0] ss:$12 sps:$4 sm:$0xff]   ;;  %v2832_v24 = vld [vmem:[#allocation5 + $0x98] ss:$12 sps:$4 sm:$0xff]   ;;  %v379_v25 = vsub.s32 0, %v3325_v23  ;;  %v383_v28 = vsub.s32 1, %v3325_v23  ;;  %2632 = vmatprep.mubr.msk.bf16.mxu1 %vm3076_vm0, %v3072_v21 }
  0x81   : > { %2617 = vmatpush3.bf16.msra.mxu1 %v2831_v20  ;;  %v2833_v26 = vld [vmem:[#allocation5 + $0x80] ss:$12 sps:$4 sm:$0xff]   ;;  %v2834_v30 = vld [vmem:[#allocation5 + $0x68] ss:$12 sps:$4 sm:$0xff]   ;;  %v2835_v35 = vld [vmem:[#allocation5 + $0x50] ss:$12 sps:$4 sm:$0xff]  }
  0x82   : > { %2618 = vmatprep.subr.bf16.mxu1 %v3072_v21  ;;  %v3332_v27 = vld [vmem:[%s3718_s2] sm:$0x7]  ;;  %v2836_v39 = vld [vmem:[#allocation5 + $0x38] ss:$12 sps:$4 sm:$0xff]   ;;  %s3075_s16 = smov 32   ;;  %vm1683_vm2 = vcmask 130048  }
  0x83   : > { %525 = vmatpush1.bf16.msra.mxu0 %v2815_v6  ;;  %v380_v29 = vrot.slane %v3332_v27, %v379_v25  ;;  %v384_v31 = vrot.slane %v3332_v27, %v383_v28  ;;  %v2837_v42 = vld [vmem:[#allocation5 + $0x20] ss:$12 sps:$4 sm:$0xff]   ;;  %v2838_v43 = vld [vmem:[#allocation5 + $0x8] ss:$12 sps:$4 sm:$0xff]   ;;  %v3077_v44 = vmov 1983009808  }
  0x84   : > { %526 = vmatprep.subr.bf16.mxu0 %v2816_v7  ;;  %v627_v45 = vunpack.c.l.s4 %v3077_v44  ;;  %v3078_v47 = vmov 1934713408   ;;  %vm2250_vm3 = vcmask 523264   ;;  %vm2253_vm4 = vcmask 785408   ;;  %s338_s12 = scalar_lea.vmem [#allocation10], %s3300_s15  ;;  %s2581_s14 = sshll.u32 %s3138_s25, 8 }
  0x85   : > { %2619 = vmatpush3.bf16.msra.mxu1 %v2832_v24  ;;  %v659_v48 = vunpack.c.l.s4 %v3078_v47  ;;  %s2385_s8 = sshll.u32 %s338_s12, 4  ;;  %s3673_s17 = scalar_lea.hbm %s3722_s6, %s2581_s14  ;;  %s3668_s8 = int_to_ptr.vmem [resolvable:$true] %s2385_s8 }
  0x86   : > { %2620 = vmatprep.subr.bf16.mxu1 %v3072_v21  ;;  %v628_v50 = vunpack.c.0.s8 %v627_v45  ;;  %s2372_s15 = scalar_lea.sflag [#allocation4], %s3297_s3  ;;  %s2987_s18 = scalar_lea.vmem %s3668_s8, 256 }
  0x87   : > { %527 = vmatpush1.bf16.msra.mxu0 %v2818_v8  ;;  %v660_v52 = vunpack.c.0.s8 %v659_v48  ;;  %p2988_p10 = scmp.ne.s32.totalorder %s3668_s8, %s2987_s18  ;;  %p3746_p6 = scmp.ne.s32.totalorder %s3738_s11, 0 }
  0x88   : > { %528 = vmatprep.subr.bf16.mxu0 %v2819_v9  ;;  %v3381_v54 = vsub.s32 %v628_v50, %v3325_v23  ;;  %s3079_s25 = smov [#allocation10]  }
  0x89   : > { %2621 = vmatpush3.bf16.msra.mxu1 %v2833_v26  ;;  %v3384_v60 = vsub.s32 %v660_v52, %v3325_v23  ;;  %p2989_p12 = pnand %p2988_p10, %p3746_p6  ;;  %s2991_s0 = sshll.u32 %s3079_s25, 4  ;;  %s2992_s0 = int_to_ptr.vmem [resolvable:$false] %s2991_s0 }
  0x8a   : > { %2622 = vmatprep.subr.bf16.mxu1 %v3072_v21  ;;  %p2994_p9 = scmp.lt.s32.totalorder %s3668_s8, %s2992_s0 }
  0x8b   : > { %529 = vmatpush1.bf16.msra.mxu0 %v2821_v10  ;;  %p2990_p3 = pneg %p2989_p12 }
  0x8c   : > { %530 = vmatprep.subr.bf16.mxu0 %v2822_v11 }
  0x8d   : > { %2623 = vmatpush3.bf16.msra.mxu1 %v2834_v30 }
  0x8e   : > { %2624 = vmatprep.subr.bf16.mxu1 %v3072_v21 }
  0x8f   : > { %531 = vmatpush1.bf16.msra.mxu0 %v2824_v12 }
  0x90   : > { %532 = vmatprep.subr.bf16.mxu0 %v2825_v13 }
  0x91   : > { %2625 = vmatpush3.bf16.msra.mxu1 %v2835_v35 }
  0x92   : > { %2626 = vmatprep.subr.bf16.mxu1 %v3072_v21 }
  0x93   : > { %533 = vmatpush1.bf16.msra.mxu0 %v2827_v14 }
  0x94   : > { %534 = vmatprep.subr.bf16.mxu0 %v2828_v15 }
  0x95   : > { %2627 = vmatpush3.bf16.msra.mxu1 %v2836_v39 }
  0x96   : > { %2628 = vmatprep.subr.bf16.mxu1 %v3072_v21 }
  0x97   : > { %535 = vmatpush1.bf16.msra.mxu0 %v2830_v16 }
  0x98   : > { %2660 = vmatprep.subr.bf16.mxu0 %v3072_v21 }
  0x99   : > { %2629 = vmatpush3.bf16.msra.mxu1 %v2837_v42 }
  0x9a   : > { %553 = vmatmul.mubr.bf16.vlgmr.msra.gmra.mxu0 %v342_v19  ;;  %2630 = vmatprep.subr.bf16.mxu1 %v3072_v21 }
  0x9b   : > { %2662 = vmatprep.mubr.msk.bf16.mxu0 %vm3076_vm0, %v3072_v21 }
  0x9d   : > { %2631 = vmatpush3.bf16.msra.mxu1 %v2838_v43 }
  0x9e   : > { %2636 = vmatprep.subr.bf16.mxu1 %v3072_v21 }
  0xa0   : > { %2633 = vmatmul.mubr.bf16.vlgmr.msra.gmra.mxu1 %v342_v19 }
  0xa1   : > { %2638 = vmatprep.mubr.msk.bf16.mxu1 %vm3076_vm0, %v3072_v21 }
 0x15a   : > { %v554_v32 = vpop.f32.mrf.mxu0 }
 0x15b   : > { %v3338_v33 = vadd.f32 %v554_v32, %v380_v29 }
 0x15c   : > { %v556_v34 = vpop.f32.mrf.mxu0 }
 0x15d   : > { %v557_v36 = vadd.f32 %v556_v34, %v384_v31  ;;  %606 = vrot.lane.b32.xlu0 %v3338_v33, %s3073_s20 }
 0x15e   : > { %v558_v37 = vpop.f32.mrf.mxu0 }
 0x15f   : > { %908 = vrot.lane.b32.xlu1 %v557_v36, %s3074_s13  ;;  %v3345_v38 = vadd.f32 %v558_v37, %v380_v29 }
 0x160   : > { %v560_v40 = vpop.f32.mrf.mxu0 }
 0x161   : > { %902 = vrot.lane.b32.xlu0 %v557_v36, %s3073_s20  ;;  %v3351_v41 = vadd.f32 %v560_v40, %v384_v31 }
 0x163   : > { %608 = vrot.lane.b32.xlu1 %v3345_v38, %s3073_s20 }
 0x165   : > { %914 = vrot.lane.b32.xlu0 %v557_v36, %s3075_s16 }
 0x167   : > { %910 = vrot.lane.b32.xlu1 %v3351_v41, %s3074_s13 }
 0x169   : > { %904 = vrot.lane.b32.xlu0 %v3351_v41, %s3073_s20 }
 0x16b   : > { %916 = vrot.lane.b32.xlu1 %v3351_v41, %s3075_s16 }
 0x16d   : > { %612 = vrot.lane.b32.xlu0 %v3338_v33, %s3074_s13 }
 0x16f   : > { %614 = vrot.lane.b32.xlu1 %v3345_v38, %s3074_s13 }
 0x171   : > { %618 = vrot.lane.b32.xlu0 %v3338_v33, %s3075_s16 }
 0x173   : > { %620 = vrot.lane.b32.xlu1 %v3345_v38, %s3075_s16 }
 0x1cf   : > { %v3376_v46 = vpop.permute.xlu0 %606 }
 0x1d1   : > { %v909_v49 = vpop.permute.xlu1 %908 }
 0x1d2   : > { %v920_v55 = vcombine.low %v557_v36, %v909_v49  ;;  %v921_v56 = vcombine.high %v557_v36, %v909_v49 }
 0x1d3   : > { %v903_v51 = vpop.permute.xlu0 %902 }
 0x1d4   : > { %v928_v62 = vrot.slane %v920_v55, %v3381_v54  ;;  %v935_v63 = vrot.slane %v921_v56, %v3381_v54 }
 0x1d5   : > { %v3378_v53 = vpop.permute.xlu1 %608 }
 0x1d7   : > { %v915_v57 = vpop.permute.xlu0 %914 }
 0x1d8   : > { %v936_v58 = vcombine.low %v903_v51, %v915_v57  ;;  %v937_v59 = vcombine.high %v903_v51, %v915_v57 }
 0x1d9   : > { %v911_v61 = vpop.permute.xlu1 %910 }
 0x1da   : > { %v944_v0 = vrot.slane %v936_v58, %v3381_v54  ;;  %v951_v1 = vrot.slane %v937_v59, %v3381_v54  ;;  %v988_v7 = vcombine.low %v3351_v41, %v911_v61  ;;  %v989_v8 = vcombine.high %v3351_v41, %v911_v61 }
 0x1db   : > { %v905_v2 = vpop.permute.xlu0 %904 }
 0x1dc   : > { %v952_v3 = vcombine.low %v928_v62, %v944_v0  ;;  %v953_v4 = vcombine.high %v928_v62, %v944_v0  ;;  %v968_v5 = vcombine.low %v935_v63, %v951_v1  ;;  %v969_v6 = vcombine.high %v935_v63, %v951_v1 }
 0x1dd   : > { %v917_v9 = vpop.permute.xlu1 %916  ;;  %v996_v19 = vrot.slane %v988_v7, %v3381_v54  ;;  %v1003_v28 = vrot.slane %v989_v8, %v3381_v54 }
 0x1de   : > { %v960_v10 = vrot.slane %v952_v3, %v3384_v60  ;;  %v967_v11 = vrot.slane %v953_v4, %v3384_v60  ;;  %v976_v12 = vrot.slane %v968_v5, %v3384_v60  ;;  %v983_v13 = vrot.slane %v969_v6, %v3384_v60 }
 0x1df   : > { %v1004_v14 = vcombine.low %v905_v2, %v917_v9  ;;  %v1005_v15 = vcombine.high %v905_v2, %v917_v9  ;;  %v613_v16 = vpop.permute.xlu0 %612 }
 0x1e0   : > { %v1056_v17 = vcombine.low %v960_v10, %v967_v11  ;;  %v2545_v18 = vcombine.high %v960_v10, %v967_v11  ;;  %v1072_v25 = vcombine.low %v976_v12, %v983_v13  ;;  %v2546_v26 = vcombine.high %v976_v12, %v983_v13 }
 0x1e1   : > { %v1012_v20 = vrot.slane %v1004_v14, %v3381_v54  ;;  %v1019_v22 = vrot.slane %v1005_v15, %v3381_v54  ;;  %v615_v24 = vpop.permute.xlu1 %614  ;;  %v624_v31 = vcombine.low %v3338_v33, %v613_v16  ;;  %v625_v32 = vcombine.high %v3338_v33, %v613_v16 }
 0x1e2   : > { %v3403_v35 = vrot.slane %v1056_v17, %v3381_v54  ;;  %v3406_v36 = vrot.slane %v2545_v18, %v3381_v54  ;;  %v3411_v43 = vrot.slane %v1072_v25, %v3381_v54  ;;  %v3414_v44 = vrot.slane %v2546_v26, %v3381_v54 }
 0x1e3   : > { %v1020_v29 = vcombine.low %v996_v19, %v1012_v20  ;;  %v1021_v30 = vcombine.high %v996_v19, %v1012_v20  ;;  %v619_v34 = vpop.permute.xlu0 %618  ;;  %v1036_v40 = vcombine.low %v1003_v28, %v1019_v22  ;;  %v1037_v41 = vcombine.high %v1003_v28, %v1019_v22 }
 0x1e4   : > { %v640_v33 = vcombine.low %v3376_v46, %v619_v34  ;;  %v641_v45 = vcombine.high %v3376_v46, %v619_v34  ;;  %v632_v47 = vrot.slane %v624_v31, %v3381_v54  ;;  %v639_v48 = vrot.slane %v625_v32, %v3381_v54 }
 0x1e5   : > { %v1028_v37 = vrot.slane %v1020_v29, %v3384_v60  ;;  %v1035_v39 = vrot.slane %v1021_v30, %v3384_v60  ;;  %v621_v42 = vpop.permute.xlu1 %620  ;;  %v692_v49 = vcombine.low %v3345_v38, %v615_v24  ;;  %v693_v50 = vcombine.high %v3345_v38, %v615_v24 }
 0x1e6   : > { %v648_v51 = vrot.slane %v640_v33, %v3381_v54  ;;  %v655_v52 = vrot.slane %v641_v45, %v3381_v54  ;;  %v708_v55 = vcombine.low %v3378_v53, %v621_v42  ;;  %v709_v56 = vcombine.high %v3378_v53, %v621_v42 }
 0x1e7   : > { %v1044_v57 = vrot.slane %v1036_v40, %v3384_v60  ;;  %v1051_v46 = vrot.slane %v1037_v41, %v3384_v60  ;;  %v1124_v58 = vcombine.low %v1028_v37, %v1035_v39  ;;  %v2547_v59 = vcombine.high %v1028_v37, %v1035_v39 }
 0x1e8   : > { %v656_v61 = vcombine.low %v632_v47, %v648_v51  ;;  %v657_v62 = vcombine.high %v632_v47, %v648_v51  ;;  %v672_v63 = vcombine.low %v639_v48, %v655_v52  ;;  %v673_v0 = vcombine.high %v639_v48, %v655_v52 }
 0x1e9   : > { %v700_v38 = vrot.slane %v692_v49, %v3381_v54  ;;  %v707_v1 = vrot.slane %v693_v50, %v3381_v54  ;;  %v716_v2 = vrot.slane %v708_v55, %v3381_v54  ;;  %v723_v3 = vrot.slane %v709_v56, %v3381_v54 }
 0x1ea   : > { %v664_v53 = vrot.slane %v656_v61, %v3384_v60  ;;  %v671_v4 = vrot.slane %v657_v62, %v3384_v60  ;;  %v680_v5 = vrot.slane %v672_v63, %v3384_v60  ;;  %v687_v6 = vrot.slane %v673_v0, %v3384_v60 }
 0x1eb   : > { %v724_v7 = vcombine.low %v700_v38, %v716_v2  ;;  %v725_v8 = vcombine.high %v700_v38, %v716_v2  ;;  %v740_v9 = vcombine.low %v707_v1, %v723_v3  ;;  %v741_v10 = vcombine.high %v707_v1, %v723_v3 }
 0x1ec   : > { %v1131_v11 = vrot.slane %v1124_v58, %v3381_v54  ;;  %v1139_v12 = vrot.slane %v2547_v59, %v3381_v54  ;;  %v1140_v13 = vcombine.low %v1044_v57, %v1051_v46  ;;  %v2548_v14 = vcombine.high %v1044_v57, %v1051_v46 }
 0x1ed   : > { %v732_v15 = vrot.slane %v724_v7, %v3384_v60  ;;  %v739_v16 = vrot.slane %v725_v8, %v3384_v60  ;;  %v748_v17 = vrot.slane %v740_v9, %v3384_v60  ;;  %v755_v18 = vrot.slane %v741_v10, %v3384_v60 }
 0x1ee   : > { %v760_v19 = vcombine.low %v664_v53, %v671_v4  ;;  %v2541_v20 = vcombine.high %v664_v53, %v671_v4  ;;  %v776_v22 = vcombine.low %v680_v5, %v687_v6  ;;  %v2542_v24 = vcombine.high %v680_v5, %v687_v6 }
 0x1ef   : > { %v828_v25 = vcombine.low %v732_v15, %v739_v16  ;;  %v2543_v26 = vcombine.high %v732_v15, %v739_v16  ;;  %v844_v28 = vcombine.low %v748_v17, %v755_v18  ;;  %v2544_v29 = vcombine.high %v748_v17, %v755_v18 }
 0x1f0   : > { %v1147_v30 = vrot.slane %v1140_v13, %v3381_v54  ;;  %v1155_v31 = vrot.slane %v2548_v14, %v3381_v54  ;;  %v1088_v32 = vcombine.low %v3403_v35, %v3406_v36  ;;  %v1104_v34 = vcombine.low %v3411_v43, %v3414_v44 }
 0x1f1   : > { %v835_v37 = vrot.slane %v828_v25, %v3381_v54  ;;  %v843_v39 = vrot.slane %v2543_v26, %v3381_v54  ;;  %v851_v40 = vrot.slane %v844_v28, %v3381_v54  ;;  %v859_v41 = vrot.slane %v2544_v29, %v3381_v54 }
 0x1f2   : > { %v767_v42 = vrot.slane %v760_v19, %v3381_v54  ;;  %v775_v33 = vrot.slane %v2541_v20, %v3381_v54  ;;  %v783_v45 = vrot.slane %v776_v22, %v3381_v54  ;;  %v791_v47 = vrot.slane %v2542_v24, %v3381_v54 }
 0x1f3   : > { %v860_v48 = vcombine.low %v835_v37, %v843_v39  ;;  %v876_v49 = vcombine.low %v851_v40, %v859_v41  ;;  %v1096_v50 = vrot.slane %v1088_v32, %v3384_v60  ;;  %v1112_v51 = vrot.slane %v1104_v34, %v3384_v60 }
 0x1f4   : > { %v1156_v52 = vcombine.low %v1131_v11, %v1139_v12  ;;  %v1172_v55 = vcombine.low %v1147_v30, %v1155_v31  ;;  %v792_v56 = vcombine.low %v767_v42, %v775_v33  ;;  %v808_v57 = vcombine.low %v783_v45, %v791_v47 }
 0x1f5   : > { %v868_v59 = vrot.slane %v860_v48, %v3384_v60  ;;  %v884_v61 = vrot.slane %v876_v49, %v3384_v60  ;;  %v1120_v62 = vcombine.low %v1096_v50, %v1112_v51  ;;  %v1157_v4 = vcombine.high %v1131_v11, %v1139_v12 }
 0x1f6   : > { %v1164_v46 = vrot.slane %v1156_v52, %v3384_v60  ;;  %v1180_v58 = vrot.slane %v1172_v55, %v3384_v60  ;;  %v800_v0 = vrot.slane %v792_v56, %v3384_v60  ;;  %v816_v38 = vrot.slane %v808_v57, %v3384_v60  ;;  %v1493_v57 = vld [vmem:[%s305_s1 + $0x8] sm:$0xff] }
 0x1f7   : > { %v892_v2 = vcombine.low %v868_v59, %v884_v61  ;;  %v1173_v5 = vcombine.high %v1147_v30, %v1155_v31  ;;  %v1121_v7 = vcombine.high %v1096_v50, %v1112_v51  ;;  %v1089_v8 = vcombine.high %v3403_v35, %v3406_v36  ;;  %v1492_v51 = vld [vmem:[%s305_s1] sm:$0xff]  ;;  %s2993_s1 = scalar_lea.vmem %s2992_s0, 512 }
 0x1f8   : > { %v1188_v63 = vcombine.low %v1164_v46, %v1180_v58  ;;  %v1189_v53 = vcombine.high %v1164_v46, %v1180_v58  ;;  %v824_v6 = vcombine.low %v800_v0, %v816_v38  ;;  %v1105_v9 = vcombine.high %v3411_v43, %v3414_v44  ;;  %p2995_p13 = scmp.lt.s32.totalorder %s2993_s1, %s2987_s18 }
 0x1f9   : > { %v1171_v14 = vrot.slane %v1157_v4, %v3384_v60  ;;  %v1187_v15 = vrot.slane %v1173_v5, %v3384_v60  ;;  %v1103_v11 = vrot.slane %v1089_v8, %v3384_v60  ;;  %v861_v35 = vcombine.high %v835_v37, %v843_v39 }
 0x1fa   : > { %v1192_v1 = vpack.c.bf16 %v1188_v63, %v1120_v62  ;;  %v896_v10 = vpack.c.bf16 %v892_v2, %v824_v6  ;;  %v1193_v13 = vpack.c.bf16 %v1189_v53, %v1121_v7  ;;  %v1119_v12 = vrot.slane %v1105_v9, %v3384_v60  ;;  %p2996_p5 = por %p2995_p13, %p2994_p9 }
 0x1fb   : > { %v1190_v17 = vcombine.low %v1171_v14, %v1187_v15  ;;  %v877_v36 = vcombine.high %v851_v40, %v859_v41  ;;  %v893_v43 = vcombine.high %v868_v59, %v884_v61  ;;  %v793_v18 = vcombine.high %v767_v42, %v775_v33 }
 0x1fc   : > { %v1499_v3 = vsel %vm1494_vm1, %v1192_v1, 0  ;;  %v1546_v16 = vsel %vm1494_vm1, %v1193_v13, 0  ;;  %v1122_v44 = vcombine.low %v1103_v11, %v1119_v12  ;;  %v809_v19 = vcombine.high %v783_v45, %v791_v47  ;;  %v597_v47 = vpop.f32.mrf.mxu1  ;;  %p2997_p1 = pnand %p2996_p5, %p2990_p3 }
 0x1fd   : > { %2637 = vmatpush3.bf16.xpose.msra.mxu1 %v1499_v3  ;;  %v825_v20 = vcombine.high %v800_v0, %v816_v38  ;;  %v875_v24 = vrot.slane %v861_v35, %v3384_v60  ;;  %v891_v25 = vrot.slane %v877_v36, %v3384_v60  ;;  %v807_v28 = vrot.slane %v793_v18, %v3384_v60 }
 0x1fe   : > { %2642 = vmatprep.subr.bf16.mxu1 %v3072_v21  ;;  %v1194_v22 = vpack.c.bf16 %v1190_v17, %v1122_v44  ;;  %v823_v29 = vrot.slane %v809_v19, %v3384_v60  ;;  %v1191_v31 = vcombine.high %v1171_v14, %v1187_v15  ;;  %v1123_v34 = vcombine.high %v1103_v11, %v1119_v12  ;;  %v2634_v48 = vpop.f32.mrf.mxu1 }
 0x1ff   : > { %v897_v26 = vpack.c.bf16 %v893_v43, %v825_v20  ;;  %v894_v32 = vcombine.low %v875_v24, %v891_v25  ;;  %v895_v42 = vcombine.high %v875_v24, %v891_v25  ;;  %v387_v44 = vsub.s32 2, %v3325_v23 }
 0x200   : > { %v1593_v30 = vsel %vm1494_vm1, %v1194_v22, 0  ;;  %v826_v37 = vcombine.low %v807_v28, %v823_v29  ;;  %v1195_v39 = vpack.c.bf16 %v1191_v31, %v1123_v34  ;;  %v827_v33 = vcombine.high %v807_v28, %v823_v29  ;;  %v600_v49 = vpop.f32.mrf.mxu1 }
 0x201   : > { %v388_v18 = vrot.slane %v3332_v27, %v387_v44 }
 0x202   : > { %v898_v40 = vpack.c.bf16 %v894_v32, %v826_v37  ;;  %v1640_v41 = vsel %vm1494_vm1, %v1195_v39, 0  ;;  %v899_v45 = vpack.c.bf16 %v895_v42, %v827_v33  ;;  %v2635_v50 = vpop.f32.mrf.mxu1 }
 0x203   : > { %v3513_v19 = vadd.f32 %v597_v47, %v388_v18  ;;  %v3519_v20 = vadd.f32 %v600_v49, %v388_v18 }
 0x204   : > { %2639 = vmatmul.mubr.msk.bf16.vlgmr.msra.gmra.mxu1 %vm1494_vm1, %v896_v10 }
 0x205   : > { %2643 = vmatpush3.bf16.xpose.msra.mxu1 %v1546_v16  ;;  %2644 = vmatprep.mubr.msk.bf16.mxu1 %vm3076_vm0, %v3072_v21 }
 0x206   : > { %2648 = vmatprep.subr.bf16.mxu1 %v3072_v21 }
 0x20c   : > { %2645 = vmatmul.mubr.msk.bf16.vlgmr.msra.gmra.mxu1 %vm1494_vm1, %v897_v26 }
 0x20d   : > { %2649 = vmatpush3.bf16.xpose.msra.mxu1 %v1593_v30  ;;  %2650 = vmatprep.mubr.msk.bf16.mxu1 %vm3076_vm0, %v3072_v21 }
 0x20e   : > { %2654 = vmatprep.subr.bf16.mxu1 %v3072_v21 }
 0x214   : > { %2651 = vmatmul.mubr.msk.bf16.vlgmr.msra.gmra.mxu1 %vm1494_vm1, %v898_v40 }
 0x215   : > { %2655 = vmatpush3.bf16.xpose.msra.mxu1 %v1640_v41  ;;  %2656 = vmatprep.mubr.msk.bf16.mxu1 %vm3076_vm0, %v3072_v21 }
 0x216   : > { %2666 = vmatprep.subr.bf16.mxu1 %v3072_v21 }
 0x21c   : > { %2657 = vmatmul.mubr.msk.bf16.vlgmr.msra.gmra.mxu1 %vm1494_vm1, %v899_v45 }
 0x21d   : > { %2668 = vmatprep.mubr.msk.bf16.mxu1 %vm3076_vm0, %v3072_v21 }
 0x2c4   : > { %v1535_v52 = vpop.f32.mrf.mxu1 }
 0x2c5   : > { %v1536_v55 = vadd.f32 %v1535_v52, %v1492_v51 }
 0x2c6   : > { %v2640_v56 = vpop.f32.mrf.mxu1 }
 0x2c7   : > { %v1684_v46 = vsel %vm1683_vm2, %v1536_v55, -inf }
 0x2c8   : > { %1685 = vmax.xlane.f32.xlu0 %v1684_v46  ;;  %v1538_v58 = vpop.f32.mrf.mxu1 }
 0x2c9   : > { %v1539_v59 = vadd.f32 %v1538_v58, %v1493_v57 }
 0x2ca   : > { %v2641_v61 = vpop.f32.mrf.mxu1 }
 0x2cb   : > { %v1687_v62 = vsel %vm1683_vm2, %v1539_v59, -inf }
 0x2cc   : > { %1688 = vmax.xlane.f32.xlu1 %v1687_v62  ;;  %v1582_v63 = vpop.f32.mrf.mxu1 }
 0x2cd   : > { %v1583_v0 = vadd.f32 %v1582_v63, %v1492_v51 }
 0x2ce   : > { %v2646_v38 = vpop.f32.mrf.mxu1 }
 0x2cf   : > { %v1690_v1 = vsel %vm1683_vm2, %v1583_v0, -inf }
 0x2d0   : > { %1691 = vmax.xlane.f32.xlu0 %v1690_v1  ;;  %v1585_v2 = vpop.f32.mrf.mxu1 }
 0x2d1   : > { %v1586_v3 = vadd.f32 %v1585_v2, %v1493_v57 }
 0x2d2   : > { %v2647_v53 = vpop.f32.mrf.mxu1 }
 0x2d3   : > { %v1693_v4 = vsel %vm1683_vm2, %v1586_v3, -inf }
 0x2d4   : > { %1694 = vmax.xlane.f32.xlu0 %v1693_v4  ;;  %v1629_v5 = vpop.f32.mrf.mxu1 }
 0x2d5   : > { %v1630_v6 = vadd.f32 %v1629_v5, %v1492_v51 }
 0x2d6   : > { %v2652_v7 = vpop.f32.mrf.mxu1 }
 0x2d7   : > { %v1696_v8 = vsel %vm1683_vm2, %v1630_v6, -inf }
 0x2d8   : > { %1697 = vmax.xlane.f32.xlu1 %v1696_v8  ;;  %v1632_v9 = vpop.f32.mrf.mxu1 }
 0x2d9   : > { %v3505_v10 = vadd.f32 %v1632_v9, %v1493_v57 }
 0x2da   : > { %v2653_v13 = vpop.f32.mrf.mxu1 }
 0x2db   : > { %v1699_v14 = vsel %vm1683_vm2, %v3505_v10, -inf }
 0x2dc   : > { %1700 = vmax.xlane.f32.xlu0 %v1699_v14  ;;  %v1676_v15 = vpop.f32.mrf.mxu1 }
 0x2dd   : > { %v1677_v11 = vadd.f32 %v1676_v15, %v1492_v51 }
 0x2de   : > { %v2658_v12 = vpop.f32.mrf.mxu1 }
 0x2df   : > { %v1702_v16 = vsel %vm1683_vm2, %v1677_v11, -inf }
 0x2e0   : > { %1703 = vmax.xlane.f32.xlu1 %v1702_v16  ;;  %v1679_v17 = vpop.f32.mrf.mxu1 }
 0x2e1   : > { %v1680_v35 = vadd.f32 %v1679_v17, %v1493_v57 }
 0x2e2   : > { %v2659_v36 = vpop.f32.mrf.mxu1 }
 0x2e3   : > { %v1705_v43 = vsel %vm1683_vm2, %v1680_v35, -inf }
 0x2e4   : > { %1706 = vmax.xlane.f32.xlu0 %v1705_v43 }
 0x2f1   : > { %1198 = vrot.lane.b32.xlu1 %v3513_v19, %s3073_s20 }
 0x2f5   : > { %1204 = vrot.lane.b32.xlu1 %v3513_v19, %s3074_s13 }
 0x2f9   : > { %1206 = vrot.lane.b32.xlu1 %v3519_v20, %s3074_s13 }
 0x2fa   : > { %1200 = vrot.lane.b32.xlu0 %v3519_v20, %s3073_s20 }
 0x2fe   : > { %1210 = vrot.lane.b32.xlu0 %v3513_v19, %s3075_s16 }
 0x351   : > { %v1686_v23 = vpop.xlane.xlu0 %1685 }
 0x352   : > { %v1708_v27 = vsub.f32 %v1536_v55, %v1686_v23 }
 0x354   : > { %v1716_v22 = vmul.f32 1.442695, %v1708_v27 }
 0x355   : > { %v1689_v24 = vpop.xlane.xlu1 %1688 }
 0x356   : > { %2847 = vpow2.f32 %v1716_v22  ;;  %v1709_v25 = vsub.f32 %v1539_v59, %v1689_v24 }
 0x358   : > { %v1718_v26 = vmul.f32 1.442695, %v1709_v25 }
 0x359   : > { %v1692_v28 = vpop.xlane.xlu0 %1691 }
 0x35a   : > { %2849 = vpow2.f32 %v1718_v26  ;;  %v1710_v29 = vsub.f32 %v1583_v0, %v1692_v28 }
 0x35c   : > { %v1720_v30 = vmul.f32 1.442695, %v1710_v29 }
 0x35d   : > { %v1695_v31 = vpop.xlane.xlu0 %1694 }
 0x35e   : > { %2851 = vpow2.f32 %v1720_v30  ;;  %v1711_v32 = vsub.f32 %v1586_v3, %v1695_v31 }
 0x360   : > { %v1722_v34 = vmul.f32 1.442695, %v1711_v32 }
 0x361   : > { %v1698_v37 = vpop.xlane.xlu1 %1697 }
 0x362   : > { %2853 = vpow2.f32 %v1722_v34  ;;  %v1712_v39 = vsub.f32 %v1630_v6, %v1698_v37 }
 0x363   : > { %v3527_v40 = vpop.eup %2847 }
 0x364   : > { %v1724_v41 = vmul.f32 1.442695, %v1712_v39  ;;  %v1732_v42 = vsel %vm1683_vm2, %v3527_v40, 0.0 }
 0x365   : > { %1733 = vadd.xlane.f32.xlu1 %v1732_v42  ;;  %v1701_v47 = vpop.xlane.xlu0 %1700 }
 0x366   : > { %2855 = vpow2.f32 %v1724_v41  ;;  %v1713_v1 = vsub.f32 %v3505_v10, %v1701_v47 }
 0x367   : > { %v3531_v33 = vpop.eup %2849 }
 0x368   : > { %v1735_v45 = vsel %vm1683_vm2, %v3531_v33, 0.0  ;;  %v1726_v2 = vmul.f32 1.442695, %v1713_v1 }
 0x369   : > { %v1704_v48 = vpop.xlane.xlu1 %1703  ;;  %1736 = vadd.xlane.f32.xlu0 %v1735_v45 }
 0x36a   : > { %v1714_v49 = vsub.f32 %v1677_v11, %v1704_v48 }
 0x36b   : > { %v3535_v50 = vpop.eup %2851 }
 0x36c   : > { %v1728_v51 = vmul.f32 1.442695, %v1714_v49  ;;  %v1738_v52 = vsel %vm1683_vm2, %v3535_v50, 0.0 }
 0x36d   : > { %1739 = vadd.xlane.f32.xlu1 %v1738_v52  ;;  %v1707_v55 = vpop.xlane.xlu0 %1706  ;;  %v1199_v5 = vpop.permute.xlu1 %1198 }
 0x36e   : > { %2857 = vpow2.f32 %v1728_v51  ;;  %v1715_v56 = vsub.f32 %v1680_v35, %v1707_v55 }
 0x36f   : > { %v3539_v57 = vpop.eup %2853 }
 0x370   : > { %v1730_v46 = vmul.f32 1.442695, %v1715_v56  ;;  %v1741_v58 = vsel %vm1683_vm2, %v3539_v57, 0.0 }
 0x371   : > { %1742 = vadd.xlane.f32.xlu0 %v1741_v58  ;;  %v1201_v4 = vpop.permute.xlu0 %1200  ;;  %v1205_v7 = vpop.permute.xlu1 %1204 }
 0x372   : > { %2859 = vpow2.f32 %v1730_v46  ;;  %v1216_v13 = vcombine.low %v3513_v19, %v1205_v7  ;;  %v1217_v14 = vcombine.high %v3513_v19, %v1205_v7 }
 0x373   : > { %v3543_v59 = vpop.eup %2855  ;;  %2861 = vpow2.f32 %v1726_v2 }
 0x374   : > { %v1744_v61 = vsel %vm1683_vm2, %v3543_v59, 0.0  ;;  %v1224_v12 = vrot.slane %v1216_v13, %v3381_v54  ;;  %v1231_v16 = vrot.slane %v1217_v14, %v3381_v54 }
 0x375   : > { %1745 = vadd.xlane.f32.xlu0 %v1744_v61  ;;  %v1211_v6 = vpop.permute.xlu0 %1210  ;;  %v1207_v15 = vpop.permute.xlu1 %1206 }
 0x376   : > { %v1232_v8 = vcombine.low %v1199_v5, %v1211_v6  ;;  %v1233_v9 = vcombine.high %v1199_v5, %v1211_v6  ;;  %v1284_v25 = vcombine.low %v3519_v20, %v1207_v15  ;;  %v1285_v26 = vcombine.high %v3519_v20, %v1207_v15 }
 0x378   : > { %v1240_v10 = vrot.slane %v1232_v8, %v3381_v54  ;;  %v1247_v11 = vrot.slane %v1233_v9, %v3381_v54  ;;  %v1292_v41 = vrot.slane %v1284_v25, %v3381_v54  ;;  %v1299_v42 = vrot.slane %v1285_v26, %v3381_v54 }
 0x37a   : > { %v1248_v17 = vcombine.low %v1224_v12, %v1240_v10  ;;  %v1249_v35 = vcombine.high %v1224_v12, %v1240_v10  ;;  %v1264_v36 = vcombine.low %v1231_v16, %v1247_v11  ;;  %v1265_v43 = vcombine.high %v1231_v16, %v1247_v11 }
 0x37b   : > { %v3547_v62 = vpop.eup %2857 }
 0x37c   : > { %v1750_v63 = vsel %vm1683_vm2, %v3547_v62, 0.0  ;;  %v1256_v18 = vrot.slane %v1248_v17, %v3384_v60  ;;  %v1263_v23 = vrot.slane %v1249_v35, %v3384_v60  ;;  %v1272_v19 = vrot.slane %v1264_v36, %v3384_v60 }
 0x37d   : > { %1751 = vadd.xlane.f32.xlu0 %v1750_v63  ;;  %v1279_v27 = vrot.slane %v1265_v43, %v3384_v60 }
 0x37e   : > { %1212 = vrot.lane.b32.xlu1 %v3519_v20, %s3075_s16  ;;  %v1352_v28 = vcombine.low %v1256_v18, %v1263_v23  ;;  %v2549_v29 = vcombine.high %v1256_v18, %v1263_v23 }
 0x37f   : > { %v3551_v0 = vpop.eup %2859  ;;  %v1368_v30 = vcombine.low %v1272_v19, %v1279_v27  ;;  %v2550_v31 = vcombine.high %v1272_v19, %v1279_v27 }
 0x380   : > { %v1753_v38 = vsel %vm1683_vm2, %v3551_v0, 0.0  ;;  %v3558_v3 = vpop.eup %2861  ;;  %v1359_v45 = vrot.slane %v1352_v28, %v3381_v54  ;;  %v1367_v48 = vrot.slane %v2549_v29, %v3381_v54 }
 0x381   : > { %1754 = vadd.xlane.f32.xlu0 %v1753_v38  ;;  %v1747_v53 = vsel %vm1683_vm2, %v3558_v3, 0.0  ;;  %v1375_v49 = vrot.slane %v1368_v30, %v3381_v54  ;;  %v1383_v51 = vrot.slane %v2550_v31, %v3381_v54 }
 0x382   : > { %v1384_v1 = vcombine.low %v1359_v45, %v1367_v48  ;;  %v1385_v11 = vcombine.high %v1359_v45, %v1367_v48 }
 0x383   : > { %v1400_v2 = vcombine.low %v1375_v49, %v1383_v51  ;;  %v1401_v12 = vcombine.high %v1375_v49, %v1383_v51 }
 0x384   : > { %v1392_v10 = vrot.slane %v1384_v1, %v3384_v60 }
 0x385   : > { %v1408_v15 = vrot.slane %v1400_v2, %v3384_v60  ;;  %v1415_v25 = vrot.slane %v1401_v12, %v3384_v60 }
 0x387   : > { %v1416_v30 = vcombine.low %v1392_v10, %v1408_v15 }
 0x3a2   : > { %1748 = vadd.xlane.f32.xlu1 %v1747_v53 }
 0x3ee   : > { %v1734_v44 = vpop.xlane.xlu1 %1733 }
 0x3f2   : > { %v1737_v22 = vpop.xlane.xlu0 %1736 }
 0x3f3   : > { %2863 = vrcp.f32 %v1737_v22 }
 0x3f6   : > { %v1740_v24 = vpop.xlane.xlu1 %1739 }
 0x3fa   : > { %v1213_v32 = vpop.permute.xlu1 %1212  ;;  %v1743_v34 = vpop.xlane.xlu0 %1742 }
 0x3fb   : > { %v1300_v37 = vcombine.low %v1201_v4, %v1213_v32  ;;  %v1301_v39 = vcombine.high %v1201_v4, %v1213_v32  ;;  %2865 = vrcp.f32 %v1743_v34  ;;  %v1417_v32 = vcombine.high %v1392_v10, %v1408_v15 }
 0x3fc   : > { %2867 = vrcp.f32 %v1734_v44 }
 0x3fd   : > { %v1308_v47 = vrot.slane %v1300_v37, %v3381_v54  ;;  %v1315_v20 = vrot.slane %v1301_v39, %v3381_v54  ;;  %2869 = vrcp.f32 %v1740_v24  ;;  %v1399_v24 = vrot.slane %v1385_v11, %v3384_v60 }
 0x3fe   : > { %v1746_v7 = vpop.xlane.xlu0 %1745 }
 0x3ff   : > { %v1316_v52 = vcombine.low %v1292_v41, %v1308_v47  ;;  %v1317_v55 = vcombine.high %v1292_v41, %v1308_v47  ;;  %v1332_v56 = vcombine.low %v1299_v42, %v1315_v20  ;;  %v1333_v46 = vcombine.high %v1299_v42, %v1315_v20 }
 0x400   : > { %v2864_v44 = vpop.eup %2863  ;;  %v1418_v49 = vcombine.low %v1399_v24, %v1415_v25  ;;  %v1419_v51 = vcombine.high %v1399_v24, %v1415_v25 }
 0x401   : > { %v1324_v58 = vrot.slane %v1316_v52, %v3384_v60  ;;  %v1331_v61 = vrot.slane %v1317_v55, %v3384_v60  ;;  %v1340_v63 = vrot.slane %v1332_v56, %v3384_v60  ;;  %v1347_v38 = vrot.slane %v1333_v46, %v3384_v60 }
 0x402   : > { %v1765_v37 = vmul.f32 %v2864_v44, %v3531_v33 }
 0x403   : > { %v1420_v53 = vcombine.low %v1324_v58, %v1331_v61  ;;  %v2551_v4 = vcombine.high %v1324_v58, %v1331_v61  ;;  %v1436_v5 = vcombine.low %v1340_v63, %v1347_v38  ;;  %v2552_v6 = vcombine.high %v1340_v63, %v1347_v38 }
 0x405   : > { %v1427_v8 = vrot.slane %v1420_v53, %v3381_v54  ;;  %v1435_v9 = vrot.slane %v2551_v4, %v3381_v54  ;;  %v1443_v13 = vrot.slane %v1436_v5, %v3381_v54  ;;  %v1451_v14 = vrot.slane %v2552_v6, %v3381_v54  ;;  %v2841_v4 = vld [vmem:[#allocation7 + $0x28] sm:$0xff]   ;;  %v2842_v5 = vld [vmem:[#allocation7 + $0x20] sm:$0xff]  }
 0x406   : > { %v1752_v16 = vpop.xlane.xlu0 %1751 }
 0x407   : > { %v1452_v17 = vcombine.low %v1427_v8, %v1435_v9  ;;  %v1468_v35 = vcombine.low %v1443_v13, %v1451_v14  ;;  %v1453_v36 = vcombine.high %v1427_v8, %v1435_v9  ;;  %v1469_v43 = vcombine.high %v1443_v13, %v1451_v14 }
 0x408   : > { %v2866_v18 = vpop.eup %2865  ;;  %2871 = vrcp.f32 %v1752_v16 }
 0x409   : > { %v1460_v23 = vrot.slane %v1452_v17, %v3384_v60  ;;  %v1476_v19 = vrot.slane %v1468_v35, %v3384_v60  ;;  %v1467_v27 = vrot.slane %v1453_v36, %v3384_v60  ;;  %v2868_v22 = vpop.eup %2867  ;;  %v1483_v26 = vrot.slane %v1469_v43, %v3384_v60 }
 0x40a   : > { %v2870_v28 = vpop.eup %2869  ;;  %v1755_v29 = vpop.xlane.xlu0 %1754  ;;  %v1767_v39 = vmul.f32 %v2866_v18, %v3539_v57  ;;  %v1764_v20 = vmul.f32 %v2868_v22, %v3527_v40 }
 0x40b   : > { %v1484_v31 = vcombine.low %v1460_v23, %v1476_v19  ;;  %v1485_v34 = vcombine.high %v1460_v23, %v1476_v19  ;;  %2873 = vrcp.f32 %v1755_v29  ;;  %v1486_v45 = vcombine.low %v1467_v27, %v1483_v26 }
 0x40c   : > { %v1487_v47 = vcombine.high %v1467_v27, %v1483_v26  ;;  %v1766_v48 = vmul.f32 %v2870_v28, %v3535_v50  ;;  %v1772_v52 = vpack.c.bf16 %v1765_v37, %v1764_v20  ;;  %2875 = vrcp.f32 %v1746_v7 }
 0x40d   : > { %v1488_v41 = vpack.c.bf16 %v1484_v31, %v1416_v30  ;;  %v1489_v42 = vpack.c.bf16 %v1485_v34, %v1417_v32  ;;  %v1490_v33 = vpack.c.bf16 %v1486_v45, %v1418_v49 }
 0x40e   : > { %v1773_v55 = vpack.c.bf16 %v1767_v39, %v1766_v48  ;;  %v1491_v57 = vpack.c.bf16 %v1487_v47, %v1419_v51 }
 0x40f   : > { %2661 = vmatpush3.bf16.msra.mxu0 %v1488_v41  ;;  %2667 = vmatpush3.bf16.msra.mxu1 %v1489_v42 }
 0x410   : > { %2672 = vmatprep.subr.bf16.mxu0 %v3072_v21  ;;  %2678 = vmatprep.subr.bf16.mxu1 %v3072_v21 }
 0x412   : > { %2663 = vmatmul.mubr.msk.bf16.vlgmr.msra.gmra.mxu0 %vm1683_vm2, %v1772_v52  ;;  %2669 = vmatmul.mubr.msk.bf16.vlgmr.msra.gmra.mxu1 %vm1683_vm2, %v1773_v55 }
 0x413   : > { %2673 = vmatpush3.bf16.msra.mxu0 %v1490_v33  ;;  %2679 = vmatpush3.bf16.msra.mxu1 %v1491_v57 }
 0x414   : > { %2680 = vmatprep.mubr.msk.bf16.mxu1 %vm3076_vm0, %v3072_v21  ;;  %2674 = vmatprep.mubr.msk.bf16.mxu0 %vm3076_vm0, %v3072_v21 }
 0x415   : > { %2684 = vmatprep.subr.bf16.mxu0 %v3072_v21  ;;  %v2872_v40 = vpop.eup %2871 }
 0x416   : > { %v1770_v56 = vmul.f32 %v2872_v40, %v3547_v62  ;;  %v2839_v62 = vld [vmem:[#allocation7 + $0x38] sm:$0xff]  }
 0x418   : > { %v2874_v50 = vpop.eup %2873 }
 0x419   : > { %v1771_v46 = vmul.f32 %v2874_v50, %v3551_v0  ;;  %v2876_v63 = vpop.eup %2875  ;;  %v2840_v0 = vld [vmem:[#allocation7 + $0x30] sm:$0xff]  }
 0x41a   : > { %v1768_v1 = vmul.f32 %v2876_v63, %v3543_v59  ;;  %v2843_v59 = vld [vmem:[#allocation7 + $0x18] sm:$0xff]  }
 0x41b   : > { %v1775_v58 = vpack.c.bf16 %v1771_v46, %v1770_v56 }
 0x41d   : > { %2681 = vmatmul.mubr.msk.bf16.vlgmr.msra.gmra.mxu1 %vm1683_vm2, %v1775_v58 }
 0x42b   : > { %v1749_v61 = vpop.xlane.xlu1 %1748 }
 0x42c   : > { %2877 = vrcp.f32 %v1749_v61 }
 0x439   : > { %v2878_v38 = vpop.eup %2877 }
 0x43a   : > { %v1769_v2 = vmul.f32 %v2878_v38, %v3558_v3  ;;  %v2844_v3 = vld [vmem:[#allocation7 + $0x10] sm:$0xff]  }
 0x43c   : > { %v1774_v53 = vpack.c.bf16 %v1769_v2, %v1768_v1 }
 0x43e   : > { %2675 = vmatmul.mubr.msk.bf16.vlgmr.msra.gmra.mxu0 %vm1683_vm2, %v1774_v53 }
 0x43f   : > { %2700 = vmatprep.mubr.msk.bf16.mxu0 %vm3076_vm0, %v3072_v21  ;;  %2685 = vmatpush3.bf16.msra.mxu0 %v2839_v62 }
 0x440   : > { %2686 = vmatprep.subr.bf16.mxu0 %v3072_v21 }
 0x443   : > { %2687 = vmatpush3.bf16.msra.mxu0 %v2840_v0 }
 0x444   : > { %2688 = vmatprep.subr.bf16.mxu0 %v3072_v21 }
 0x447   : > { %2689 = vmatpush3.bf16.msra.mxu0 %v2841_v4 }
 0x448   : > { %2690 = vmatprep.subr.bf16.mxu0 %v3072_v21 }
 0x44b   : > { %2691 = vmatpush3.bf16.msra.mxu0 %v2842_v5 }
 0x44c   : > { %2692 = vmatprep.subr.bf16.mxu0 %v3072_v21 }
 0x44f   : > { %2693 = vmatpush3.bf16.msra.mxu0 %v2843_v59 }
 0x450   : > { %2694 = vmatprep.subr.bf16.mxu0 %v3072_v21 }
 0x453   : > { %2695 = vmatpush3.bf16.msra.mxu0 %v2844_v3 }
 0x454   : > { %2696 = vmatprep.subr.bf16.mxu0 %v3072_v21 }
 0x4d2   : > { %v1813_v6 = vpop.f32.mrf.mxu0  ;;  %v1857_v7 = vpop.f32.mrf.mxu1 }
 0x4d4   : > { %v2664_v8 = vpop.f32.mrf.mxu0  ;;  %v2670_v9 = vpop.f32.mrf.mxu1 }
 0x4d6   : > { %v1816_v13 = vpop.f32.mrf.mxu0  ;;  %v1860_v14 = vpop.f32.mrf.mxu1 }
 0x4d8   : > { %v2665_v10 = vpop.f32.mrf.mxu0  ;;  %v2671_v15 = vpop.f32.mrf.mxu1 }
 0x4dd   : > { %v1945_v11 = vpop.f32.mrf.mxu1 }
 0x4de   : > { %v1968_v35 = vcombine.low %v1857_v7, %v1945_v11  ;;  %v1969_v36 = vcombine.high %v1857_v7, %v1945_v11 }
 0x4df   : > { %v2682_v12 = vpop.f32.mrf.mxu1 }
 0x4e0   : > { %v1976_v19 = vrot.slane %v1968_v35, %v3381_v54  ;;  %v1983_v27 = vrot.slane %v1969_v36, %v3381_v54 }
 0x4e1   : > { %v1948_v16 = vpop.f32.mrf.mxu1 }
 0x4e2   : > { %v2036_v25 = vcombine.low %v1860_v14, %v1948_v16  ;;  %v2037_v26 = vcombine.high %v1860_v14, %v1948_v16  ;;  %v2845_v14 = vld [vmem:[#allocation7 + $0x8] sm:$0xff]  }
 0x4e3   : > { %v2683_v17 = vpop.f32.mrf.mxu1  ;;  %2697 = vmatpush3.bf16.msra.mxu0 %v2845_v14 }
 0x4e4   : > { %v2044_v20 = vrot.slane %v2036_v25, %v3381_v54  ;;  %v2051_v48 = vrot.slane %v2037_v26, %v3381_v54  ;;  %2698 = vmatprep.subr.bf16.mxu0 %v3072_v21 }
 0x4fe   : > { %v1901_v43 = vpop.f32.mrf.mxu0 }
 0x4ff   : > { %v1952_v44 = vcombine.low %v1813_v6, %v1901_v43  ;;  %v1953_v18 = vcombine.high %v1813_v6, %v1901_v43 }
 0x500   : > { %v2676_v23 = vpop.f32.mrf.mxu0 }
 0x501   : > { %v1960_v22 = vrot.slane %v1952_v44, %v3381_v54  ;;  %v1967_v24 = vrot.slane %v1953_v18, %v3381_v54 }
 0x502   : > { %v1904_v28 = vpop.f32.mrf.mxu0 }
 0x503   : > { %v1984_v29 = vcombine.low %v1960_v22, %v1976_v19  ;;  %v1985_v30 = vcombine.high %v1960_v22, %v1976_v19  ;;  %v2000_v31 = vcombine.low %v1967_v24, %v1983_v27  ;;  %v2001_v32 = vcombine.high %v1967_v24, %v1983_v27  ;;  %v2846_v22 = vld [vmem:[#allocation7] sm:$0xff]  }
 0x504   : > { %v2020_v34 = vcombine.low %v1816_v13, %v1904_v28  ;;  %v2021_v37 = vcombine.high %v1816_v13, %v1904_v28  ;;  %v2677_v39 = vpop.f32.mrf.mxu0  ;;  %2699 = vmatpush3.bf16.msra.mxu0 %v2846_v22 }
 0x505   : > { %v1992_v41 = vrot.slane %v1984_v29, %v3384_v60  ;;  %v1999_v42 = vrot.slane %v1985_v30, %v3384_v60  ;;  %v2008_v45 = vrot.slane %v2000_v31, %v3384_v60  ;;  %v2015_v47 = vrot.slane %v2001_v32, %v3384_v60 }
 0x506   : > { %v2028_v49 = vrot.slane %v2020_v34, %v3381_v54  ;;  %v2035_v51 = vrot.slane %v2021_v37, %v3381_v54 }
 0x507   : > { %v2088_v52 = vcombine.low %v1992_v41, %v1999_v42  ;;  %v2561_v55 = vcombine.high %v1992_v41, %v1999_v42  ;;  %v2104_v33 = vcombine.low %v2008_v45, %v2015_v47  ;;  %v2562_v57 = vcombine.high %v2008_v45, %v2015_v47 }
 0x508   : > { %v2052_v40 = vcombine.low %v2028_v49, %v2044_v20  ;;  %v2053_v50 = vcombine.high %v2028_v49, %v2044_v20  ;;  %v2068_v56 = vcombine.low %v2035_v51, %v2051_v48  ;;  %v2069_v46 = vcombine.high %v2035_v51, %v2051_v48 }
 0x509   : > { %v2095_v58 = vrot.slane %v2088_v52, %v3381_v54  ;;  %v2103_v61 = vrot.slane %v2561_v55, %v3381_v54  ;;  %v2111_v63 = vrot.slane %v2104_v33, %v3381_v54  ;;  %v2119_v38 = vrot.slane %v2562_v57, %v3381_v54 }
 0x50a   : > { %v2060_v1 = vrot.slane %v2052_v40, %v3384_v60  ;;  %v2067_v2 = vrot.slane %v2053_v50, %v3384_v60  ;;  %v2076_v53 = vrot.slane %v2068_v56, %v3384_v60  ;;  %v2083_v62 = vrot.slane %v2069_v46, %v3384_v60  ;;  %v2565_v50 = vld [vmem:[%s3720_s4] ss:$0 sm:$0xff] }
 0x50b   : > { %v2121_v0 = vcombine.high %v2095_v58, %v2103_v61  ;;  %v2137_v4 = vcombine.high %v2111_v63, %v2119_v38  ;;  %v2120_v5 = vcombine.low %v2095_v58, %v2103_v61  ;;  %v2136_v59 = vcombine.low %v2111_v63, %v2119_v38 }
 0x50c   : > { %v2156_v3 = vcombine.low %v2060_v1, %v2067_v2  ;;  %v2563_v6 = vcombine.high %v2060_v1, %v2067_v2  ;;  %v2172_v7 = vcombine.low %v2076_v53, %v2083_v62  ;;  %v2564_v8 = vcombine.high %v2076_v53, %v2083_v62 }
 0x50d   : > { %v2128_v9 = vrot.slane %v2120_v5, %v3384_v60  ;;  %v2144_v13 = vrot.slane %v2136_v59, %v3384_v60  ;;  %v2135_v16 = vrot.slane %v2121_v0, %v3384_v60  ;;  %v2151_v17 = vrot.slane %v2137_v4, %v3384_v60 }
 0x50e   : > { %v2163_v10 = vrot.slane %v2156_v3, %v3381_v54  ;;  %v2171_v15 = vrot.slane %v2563_v6, %v3381_v54  ;;  %v2179_v11 = vrot.slane %v2172_v7, %v3381_v54  ;;  %v2187_v12 = vrot.slane %v2564_v8, %v3381_v54 }
 0x50f   : > { %v2152_v35 = vcombine.low %v2128_v9, %v2144_v13  ;;  %v2154_v24 = vcombine.low %v2135_v16, %v2151_v17  ;;  %v2153_v26 = vcombine.high %v2128_v9, %v2144_v13  ;;  %v2155_v21 = vcombine.high %v2135_v16, %v2151_v17 }
 0x510   : > { %v2189_v36 = vcombine.high %v2163_v10, %v2171_v15  ;;  %v2205_v43 = vcombine.high %v2179_v11, %v2187_v12  ;;  %v2188_v44 = vcombine.low %v2163_v10, %v2171_v15  ;;  %v2204_v18 = vcombine.low %v2179_v11, %v2187_v12 }
 0x512   : > { %v2203_v23 = vrot.slane %v2189_v36, %v3384_v60  ;;  %v2219_v19 = vrot.slane %v2205_v43, %v3384_v60  ;;  %v2196_v27 = vrot.slane %v2188_v44, %v3384_v60  ;;  %v2212_v54 = vrot.slane %v2204_v18, %v3384_v60 }
 0x514   : > { %v2222_v25 = vcombine.low %v2203_v23, %v2219_v19  ;;  %v2221_v28 = vcombine.high %v2196_v27, %v2212_v54  ;;  %v2220_v29 = vcombine.low %v2196_v27, %v2212_v54  ;;  %v2223_v32 = vcombine.high %v2203_v23, %v2219_v19 }
 0x516   : > { %v2797_v30 = vpack.i.bf16 %v2222_v25, %v2154_v24  ;;  %v2792_v31 = vpack.i.bf16 %v2221_v28, %v2153_v26  ;;  %v2802_v34 = vpack.i.bf16 %v2223_v32, %v2155_v21 }
 0x518   : > { %2798 = vrot.lane.b32.xlu0 %v2797_v30, %s3074_s13  ;;  %2793 = vrot.lane.b32.xlu1 %v2792_v31, %s3075_s16 }
 0x51c   : > { %2803 = vrot.lane.b32.xlu1 %v2802_v34, %s3073_s20 }
 0x58a   : > { %v2799_v37 = vpop.permute.xlu0 %2798  ;;  %v2794_v60 = vpop.permute.xlu1 %2793 }
 0x58b   : > { %v2796_v39 = vunpack.i.h.bf16 %v2794_v60  ;;  %v2795_v41 = vunpack.i.l.bf16 %v2794_v60  ;;  %v2801_v42 = vunpack.i.h.bf16 %v2799_v37  ;;  %v2800_v45 = vunpack.i.l.bf16 %v2799_v37 }
 0x58d   : > { %v2248_v47 = vsel %vm1494_vm1, %v2152_v35, %v2795_v41  ;;  %v2249_v20 = vsel %vm1494_vm1, %v2220_v29, %v2796_v39 }
 0x58e   : > { %v2804_v48 = vpop.permute.xlu1 %2803  ;;  %v2251_v52 = vsel %vm2250_vm3, %v2248_v47, %v2800_v45  ;;  %v2252_v55 = vsel %vm2250_vm3, %v2249_v20, %v2801_v42 }
 0x58f   : > { %v2806_v49 = vunpack.i.h.bf16 %v2804_v48  ;;  %v2805_v51 = vunpack.i.l.bf16 %v2804_v48 }
 0x591   : > { %v2254_v33 = vsel %vm2253_vm4, %v2251_v52, %v2805_v51  ;;  %v2255_v57 = vsel %vm2253_vm4, %v2252_v55, %v2806_v49 }
 0x592   : > { %v2256_v40 = vpack.c.bf16 %v2255_v57, %v2254_v33 }
 0x594   : > { %2701 = vmatmul.mubr.bf16.vlgmr.msra.gmra.mxu0 %v2256_v40 }
 0x654   : > { %v2362_v56 = vpop.f32.mrf.mxu0 }
 0x655   : > { %v2363_v46 = vadd.f32 %v2565_v50, %v2362_v56 }
 0x656   : > { %v2702_v58 = vpop.f32.mrf.mxu0 }
 0x657   : > { %2369 = vst [vmem:[%s338_s12] sm:$0xff] %v2363_v46 }
 0x658   : > { %v2365_v61 = vpop.f32.mrf.mxu0 }
 0x659   : > { %v2366_v63 = vadd.f32 %v2565_v50, %v2365_v61 }
 0x65a   : > { %v2703_v38 = vpop.f32.mrf.mxu0 }
 0x65b   : > { %2370 = vst [vmem:[%s338_s12 + $0x8] sm:$0xff] %v2366_v63 }
 0x65c   : > { %3000 = shalt.err (!%p2997_p1)
}
 0x65d   : > { %s3001_s27 = scalar_lea.hbm %s3673_s17, 256  ;;  %s3005_s13 = scalar_lea.hbm %s3722_s6, 512 }
 0x65e   : > { %p3002_p4 = scmp.ne.s32.totalorder %s3673_s17, %s3001_s27  ;;  %p3006_p0 = scmp.lt.s32.totalorder %s3673_s17, %s3722_s6 }
 0x65f   : > { %p3007_p11 = scmp.lt.s32.totalorder %s3005_s13, %s3001_s27 }
 0x660   : > { %p3003_p7 = pnand %p3002_p4, %p3746_p6 }
 0x661   : > { %p3008_p8 = por %p3007_p11, %p3006_p0 }
 0x662   : > { %p3004_p2 = pneg %p3003_p7 }
 0x664   : > { %p3009_p10 = pnand %p3008_p8, %p3004_p2 }
 0x666   : > { %3012 = shalt.err (!%p3009_p10)
}
 0x667   : > { %s3080_s10 = smov 128   ;;  %s3081_s12 = smov 8  }
 0x668   : > { %2716 = dma.vmem_to_hbm [thread:$0]  (%p3746_p6), %s3668_s8, 256, %s3673_s17, %s2372_s15, %s3080_s10, %s3080_s10, %s3081_s12  }
 0x669 PF: > { %s2400_s14 = sand.u32 1, %s3047_s21   ;;  %p3747_p12 = scmp.ne.s32.totalorder %s3732_s28, 0 }
 0x66a   : > { %p3748_p3 = scmp.ge.s32.totalorder %s3059_s24, 2  ;;  %s2401_s30 = scalar_lea.sflag [#allocation4], %s2400_s14 }
 0x66c   : > { %p2733_p9 = pnand %p3748_p3, %p3747_p12 }
 0x66e   : > { %p2734_p13 = pneg %p2733_p9 }
 0x670   : > { %3042 = dma.done.wait (%p2734_p13), %s2401_s30, 256  }
 0x671   : > { %3044 = vsyncadd (%p2734_p13), %s2401_s30, 4294967040  ;;  %p23_p5 = scmp.ge.s32.totalorder %s3189_s26, 4   ;;  %s3749_s21 = smov %s3051_s22 }
 0x672   : > { %s3750_s22 = smov %s3055_s23  ;;  %s3751_s23 = smov %s3198_s9 }
 0x673   : > { %s3752_s24 = smov %s3189_s26  ;;  %25 = sbr.rel (!%p23_p5) target bundleno = 12 (0xc), region = 110 }
 0x678   :  { %2406 = vsyncpa [#allocation3], 1 }
 0x679   :  { %2408 = vsyncpa [#allocation3 + $0x1], 1 }
 0x67a   :  { %2409 = vsyncpa [#allocation6], 1 }
 0x67b   :  { %2410 = vsyncpa [#allocation9], 1 }
 0x67c   :  { %2412 = vsyncpa [#allocation9 + $0x1], 1 }
 0x67d   :  { %2413 = vsyncpa [#allocation4], 1 }
 0x67e   :  { %2415 = vsyncpa [#allocation4 + $0x1], 1 }

</bundles_post_ra>
